<compile_context>
chip_gen: v5e
topology: v5e:2x2
jax: 0.10.0
libtpu: 0.0.40
codegen_flags: <defaults>
</compile_context>

<pallas_src>
import functools

import jax
import jax.numpy as jnp
from jax.experimental import pallas as pl
from jax.experimental.pallas import tpu as pltpu


_LP = 8  # left halo offset in the pad scratch -> interior stores are sublane-aligned


def _double_conv_kernel(x_ref, w1_ref, w2_ref, b1_ref, b2_ref, o_ref,
                        xpad_ref, ypad_ref, *, H, W, Wp, Cin, Cout):
    """One grid step = one (already max-pooled) image; both convs fused in VMEM.

    x_ref   : (1, H, W, Cin)     bf16  pooled NHWC input
    w1_ref  : (9, Cin, Cout)     bf16  conv1 weights (BN scale folded), tap-major
    w2_ref  : (9, Cout, Cout)    bf16  conv2 weights (BN scale folded), tap-major
    b1_ref  : (1, Cout)          f32   folded bias (beta + scale*(conv_bias - mean))
    b2_ref  : (1, Cout)          f32   folded bias
    o_ref   : (1, H*W, Cout)     bf16  output
    xpad_ref: (H+2, Wp, Cin)     bf16  scratch; interior at [1:H+1, _LP:_LP+W]
    ypad_ref: (H+2, Wp, Cout)    bf16  scratch for the conv1 activation
    """

    def zero_halo(ref, C):
        # Zero only the halo cells the taps actually read; the interior is fully
        # overwritten below.  Zeroing every step (not under pl.when(pid == 0))
        # keeps this correct when the "parallel" grid is sharded across
        # TensorCores, where each core owns its own scratch and a different
        # program-id range.
        ref[0:1, :, :] = jnp.zeros((1, Wp, C), ref.dtype)                      # top row
        ref[H + 1:H + 2, :, :] = jnp.zeros((1, Wp, C), ref.dtype)              # bottom row
        ref[:, _LP - 1:_LP, :] = jnp.zeros((H + 2, 1, C), ref.dtype)           # left col
        ref[:, _LP + W:_LP + W + 1, :] = jnp.zeros((H + 2, 1, C), ref.dtype)   # right col

    def conv3x3(padded, w_ref, C):
        # Small-channel path: 9 accumulated (H*W, C) @ (C, Cout) MXU matmuls;
        # avoids materializing a lane-concatenated (H*W, 9*C) im2col buffer.
        acc = None
        for t in range(9):
            dy, dx = t // 3, t % 3
            c0 = _LP - 1 + dx
            tap = padded[dy:dy + H, c0:c0 + W, :].reshape(H * W, C)
            part = jnp.dot(tap, w_ref[t], preferred_element_type=jnp.float32)
            acc = part if acc is None else acc + part
        return acc                                                   # (H*W, Cout) f32

    zero_halo(xpad_ref, Cin)
    zero_halo(ypad_ref, Cout)

    # ---- conv1 (+ folded BN) + ReLU, entirely in VMEM ----
    xpad_ref[1:H + 1, _LP:_LP + W, :] = x_ref[0]                     # bf16, aligned store
    acc1 = conv3x3(xpad_ref[...], w1_ref, Cin)
    y1 = jnp.maximum(acc1 + b1_ref[0], 0.0)                          # (H*W, Cout) f32

    # ---- conv2 (+ folded BN) + ReLU ----
    ypad_ref[1:H + 1, _LP:_LP + W, :] = y1.reshape(H, W, Cout).astype(ypad_ref.dtype)
    acc2 = conv3x3(ypad_ref[...], w2_ref, Cout)
    o_ref[0] = jnp.maximum(acc2 + b2_ref[0], 0.0).astype(o_ref.dtype)


def _fold_bn(conv_bias, gamma, beta, running_mean, running_var, eps=1e-5):
    scale = gamma / jnp.sqrt(running_var + eps)
    bias = beta + scale * (conv_bias - running_mean)
    return scale.astype(jnp.float32), bias.astype(jnp.float32)


def _max_pool_2x2(x_nhwc):
    """F.max_pool2d(kernel_size=2) semantics (stride 2, floor mode)."""
    N, Hin, Win, C = x_nhwc.shape
    H, W = Hin // 2, Win // 2
    x = x_nhwc[:, :2 * H, :2 * W, :]
    return x.reshape(N, H, 2, W, 2, C).max(axis=(2, 4))


def _vmem_limit_bytes():
    """Generation-aware VMEM budget: ~3/4 of physical, capped at 96 MiB."""
    try:
        cap = pltpu.get_tpu_info().vmem_capacity_bytes
    except Exception:
        cap = 128 * 1024 * 1024
    return int(min(cap * 3 // 4, 96 * 1024 * 1024))


def down_pallas(x_nchw, params):
    """Equivalent of Down.forward (max_pool2d(2) -> DoubleConv). NCHW in / NCHW out."""
    # bf16 BEFORE transpose+pool: halves the full-resolution wrapper HBM traffic.
    x = jnp.transpose(x_nchw.astype(jnp.bfloat16), (0, 2, 3, 1))     # NCHW -> NHWC
    x = _max_pool_2x2(x)                                             # bf16 pool
    N, H, W, Cin = x.shape
    Cout = params["w1"].shape[-1]
    Wp = -(-(_LP + W + 1) // 8) * 8                                  # aligned scratch width

    # Fold BN scale into the conv weights; only a per-channel bias stays in-kernel.
    s1, b1 = _fold_bn(params["b1"], params["g1"], params["beta1"],
                      params["rm1"], params["rv1"])
    s2, b2 = _fold_bn(params["b2"], params["g2"], params["beta2"],
                      params["rm2"], params["rv2"])
    w1 = (params["w1"] * s1).reshape(9, Cin, Cout).astype(jnp.bfloat16)
    w2 = (params["w2"] * s2).reshape(9, Cout, Cout).astype(jnp.bfloat16)

    kernel = functools.partial(_double_conv_kernel,
                               H=H, W=W, Wp=Wp, Cin=Cin, Cout=Cout)

    flops = 2 * N * H * W * 9 * Cout * (Cin + Cout)
    bytes_accessed = (N * H * W * Cin * 2 + w1.size * 2 + w2.size * 2
                      + 2 * Cout * 4 + N * H * W * Cout * 2)
    cost = pl.CostEstimate(flops=flops, transcendentals=0,
                           bytes_accessed=bytes_accessed)

    out = pl.pallas_call(
        kernel,
        out_shape=jax.ShapeDtypeStruct((N, H * W, Cout), jnp.bfloat16),
        grid_spec=pltpu.PrefetchScalarGridSpec(
            num_scalar_prefetch=0,
            grid=(N,),
            in_specs=[
                pl.BlockSpec((1, H, W, Cin), lambda n: (n, 0, 0, 0)),
                pl.BlockSpec((9, Cin, Cout), lambda n: (0, 0, 0)),
                pl.BlockSpec((9, Cout, Cout), lambda n: (0, 0, 0)),
                pl.BlockSpec((1, Cout), lambda n: (0, 0)),
                pl.BlockSpec((1, Cout), lambda n: (0, 0)),
            ],
            out_specs=pl.BlockSpec((1, H * W, Cout), lambda n: (n, 0, 0)),
            scratch_shapes=[
                pltpu.VMEM((H + 2, Wp, Cin), jnp.bfloat16),
                pltpu.VMEM((H + 2, Wp, Cout), jnp.bfloat16),
            ],
        ),
        compiler_params=pltpu.CompilerParams(
            dimension_semantics=("parallel",),
            vmem_limit_bytes=_vmem_limit_bytes(),
        ),
        cost_estimate=cost,
    )(x, w1, w2, b1.reshape(1, Cout), b2.reshape(1, Cout))

    # Downstream consumers that accept NHWC/bf16 could skip this transpose + upcast.
    out = out.reshape(N, H, W, Cout)
    return jnp.transpose(out, (0, 3, 1, 2)).astype(jnp.float32)      # NHWC -> NCHW


def _reference(x_nchw, params):
    """Pure-JAX (f32) reference for correctness checking."""
    x = jnp.transpose(x_nchw, (0, 2, 3, 1)).astype(jnp.float32)
    x = _max_pool_2x2(x)

    def block(x, w, cb, g, be, rm, rv):
        y = jax.lax.conv_general_dilated(
            x, w, window_strides=(1, 1), padding="SAME",
            dimension_numbers=("NHWC", "HWIO", "NHWC"))
        y = y + cb
        y = g * (y - rm) / jnp.sqrt(rv + 1e-5) + be
        return jnp.maximum(y, 0.0)

    y = block(x, params["w1"], params["b1"], params["g1"], params["beta1"],
              params["rm1"], params["rv1"])
    y = block(y, params["w2"], params["b2"], params["g2"], params["beta2"],
              params["rm2"], params["rv2"])
    return jnp.transpose(y, (0, 3, 1, 2))


def make_params(key, in_ch, out_ch):
    ks = jax.random.split(key, 8)
    fan1 = in_ch * 9
    fan2 = out_ch * 9
    return {
        # Conv weights stored HWIO (3, 3, Cin, Cout)
        "w1": jax.random.normal(ks[0], (3, 3, in_ch, out_ch), jnp.float32) / jnp.sqrt(fan1),
        "b1": jax.random.normal(ks[1], (out_ch,), jnp.float32) * 0.05,
        "w2": jax.random.normal(ks[2], (3, 3, out_ch, out_ch), jnp.float32) / jnp.sqrt(fan2),
        "b2": jax.random.normal(ks[3], (out_ch,), jnp.float32) * 0.05,
        # BatchNorm affine + running stats (non-trivial so the fold is exercised)
        "g1": 1.0 + 0.1 * jax.random.normal(ks[4], (out_ch,), jnp.float32),
        "beta1": 0.1 * jax.random.normal(ks[5], (out_ch,), jnp.float32),
        "rm1": jnp.zeros((out_ch,), jnp.float32),
        "rv1": jnp.ones((out_ch,), jnp.float32),
        "g2": 1.0 + 0.1 * jax.random.normal(ks[6], (out_ch,), jnp.float32),
        "beta2": 0.1 * jax.random.normal(ks[7], (out_ch,), jnp.float32),
        "rm2": jnp.zeros((out_ch,), jnp.float32),
        "rv2": jnp.ones((out_ch,), jnp.float32),
    }


if __name__ == "__main__":
    key = jax.random.PRNGKey(0)
    kx, kp = jax.random.split(key)

    N, Cin, Cout, H, W = 2, 4, 8, 16, 16
    x = jax.random.normal(kx, (N, Cin, H, W), jnp.float32)
    params = make_params(kp, Cin, Cout)

    out = down_pallas(x, params)
    out = jax.block_until_ready(out)

    ref = _reference(x, params)
    assert out.shape == (N, Cout, H // 2, W // 2), out.shape
    max_err = float(jnp.max(jnp.abs(out - ref)))
    # bf16 MXU inputs + bf16 output vs. an f32 reference -> loose tolerance.
    assert jnp.allclose(out, ref, atol=8e-2, rtol=8e-2), \
        f"mismatch vs JAX reference (max abs err {max_err})"

    print("KERNEL_OK")
</pallas_src>

<mosaic_0001>
module attributes {stable_mosaic.version = 11 : i64} {
  func.func @_double_conv_kernel(%arg0: i32, %arg1: memref<1x8x8x4xbf16, #tpu.memory_space<vmem>>, %arg2: memref<9x4x8xbf16, #tpu.memory_space<vmem>>, %arg3: memref<9x8x8xbf16, #tpu.memory_space<vmem>>, %arg4: memref<1x8xf32, #tpu.memory_space<vmem>>, %arg5: memref<1x8xf32, #tpu.memory_space<vmem>>, %arg6: memref<1x64x8xbf16, #tpu.memory_space<vmem>>, %arg7: memref<10x24x4xbf16, #tpu.memory_space<vmem>>, %arg8: memref<10x24x8xbf16, #tpu.memory_space<vmem>>) attributes {dimension_semantics = [#tpu.dimension_semantics<parallel>], iteration_bounds = array<i64: 2>, scalar_prefetch = 0 : i64, scratch_operands = 2 : i64, tpu.core_type = #tpu.core_type<tc>, window_params = [{transform_indices = @transform_0, window_bounds = array<i64: 1, 8, 8, 4>}, {pipeline_mode = #tpu.pipeline_mode<synchronous>, transform_indices = @transform_1, window_bounds = array<i64: 9, 4, 8>}, {pipeline_mode = #tpu.pipeline_mode<synchronous>, transform_indices = @transform_2, window_bounds = array<i64: 9, 8, 8>}, {pipeline_mode = #tpu.pipeline_mode<synchronous>, transform_indices = @transform_3, window_bounds = array<i64: 1, 8>}, {pipeline_mode = #tpu.pipeline_mode<synchronous>, transform_indices = @transform_4, window_bounds = array<i64: 1, 8>}, {transform_indices = @transform_5, window_bounds = array<i64: 1, 64, 8>}]} {
    %cst = arith.constant 0.000000e+00 : bf16
    %0 = vector.broadcast %cst : bf16 to vector<1x24x4xbf16>
    %c0 = arith.constant 0 : index
    %c0_0 = arith.constant 0 : index
    %c0_1 = arith.constant 0 : index
    %1 = vector.load %arg7[%c0, %c0_0, %c0_1] : memref<10x24x4xbf16, #tpu.memory_space<vmem>>, vector<1x24x4xbf16>
    tpu.vector_store %arg7[%c0, %c0_0, %c0_1], %0 {strides = array<i32>} : memref<10x24x4xbf16, #tpu.memory_space<vmem>>, vector<1x24x4xbf16>,
    %cst_2 = arith.constant 0.000000e+00 : bf16
    %2 = vector.broadcast %cst_2 : bf16 to vector<1x24x4xbf16>
    %c9 = arith.constant 9 : index
    %c0_3 = arith.constant 0 : index
    %c0_4 = arith.constant 0 : index
    %3 = vector.load %arg7[%c9, %c0_3, %c0_4] : memref<10x24x4xbf16, #tpu.memory_space<vmem>>, vector<1x24x4xbf16>
    tpu.vector_store %arg7[%c9, %c0_3, %c0_4], %2 {strides = array<i32>} : memref<10x24x4xbf16, #tpu.memory_space<vmem>>, vector<1x24x4xbf16>,
    %cst_5 = arith.constant 0.000000e+00 : bf16
    %4 = vector.broadcast %cst_5 : bf16 to vector<10x1x4xbf16>
    %c0_6 = arith.constant 0 : index
    %c7 = arith.constant 7 : index
    %c0_7 = arith.constant 0 : index
    %5 = vector.load %arg7[%c0_6, %c7, %c0_7] : memref<10x24x4xbf16, #tpu.memory_space<vmem>>, vector<10x1x4xbf16>
    tpu.vector_store %arg7[%c0_6, %c7, %c0_7], %4 {strides = array<i32>} : memref<10x24x4xbf16, #tpu.memory_space<vmem>>, vector<10x1x4xbf16>,
    %cst_8 = arith.constant 0.000000e+00 : bf16
    %6 = vector.broadcast %cst_8 : bf16 to vector<10x1x4xbf16>
    %c0_9 = arith.constant 0 : index
    %c16 = arith.constant 16 : index
    %c0_10 = arith.constant 0 : index
    %7 = vector.load %arg7[%c0_9, %c16, %c0_10] : memref<10x24x4xbf16, #tpu.memory_space<vmem>>, vector<10x1x4xbf16>
    tpu.vector_store %arg7[%c0_9, %c16, %c0_10], %6 {strides = array<i32>} : memref<10x24x4xbf16, #tpu.memory_space<vmem>>, vector<10x1x4xbf16>,
    %cst_11 = arith.constant 0.000000e+00 : bf16
    %8 = vector.broadcast %cst_11 : bf16 to vector<1x24x8xbf16>
    %c0_12 = arith.constant 0 : index
    %c0_13 = arith.constant 0 : index
    %c0_14 = arith.constant 0 : index
    %9 = vector.load %arg8[%c0_12, %c0_13, %c0_14] : memref<10x24x8xbf16, #tpu.memory_space<vmem>>, vector<1x24x8xbf16>
    tpu.vector_store %arg8[%c0_12, %c0_13, %c0_14], %8 {strides = array<i32>} : memref<10x24x8xbf16, #tpu.memory_space<vmem>>, vector<1x24x8xbf16>,
    %cst_15 = arith.constant 0.000000e+00 : bf16
    %10 = vector.broadcast %cst_15 : bf16 to vector<1x24x8xbf16>
    %c9_16 = arith.constant 9 : index
    %c0_17 = arith.constant 0 : index
    %c0_18 = arith.constant 0 : index
    %11 = vector.load %arg8[%c9_16, %c0_17, %c0_18] : memref<10x24x8xbf16, #tpu.memory_space<vmem>>, vector<1x24x8xbf16>
    tpu.vector_store %arg8[%c9_16, %c0_17, %c0_18], %10 {strides = array<i32>} : memref<10x24x8xbf16, #tpu.memory_space<vmem>>, vector<1x24x8xbf16>,
    %cst_19 = arith.constant 0.000000e+00 : bf16
    %12 = vector.broadcast %cst_19 : bf16 to vector<10x1x8xbf16>
    %c0_20 = arith.constant 0 : index
    %c7_21 = arith.constant 7 : index
    %c0_22 = arith.constant 0 : index
    %13 = vector.load %arg8[%c0_20, %c7_21, %c0_22] : memref<10x24x8xbf16, #tpu.memory_space<vmem>>, vector<10x1x8xbf16>
    tpu.vector_store %arg8[%c0_20, %c7_21, %c0_22], %12 {strides = array<i32>} : memref<10x24x8xbf16, #tpu.memory_space<vmem>>, vector<10x1x8xbf16>,
    %cst_23 = arith.constant 0.000000e+00 : bf16
    %14 = vector.broadcast %cst_23 : bf16 to vector<10x1x8xbf16>
    %c0_24 = arith.constant 0 : index
    %c16_25 = arith.constant 16 : index
    %c0_26 = arith.constant 0 : index
    %15 = vector.load %arg8[%c0_24, %c16_25, %c0_26] : memref<10x24x8xbf16, #tpu.memory_space<vmem>>, vector<10x1x8xbf16>
    tpu.vector_store %arg8[%c0_24, %c16_25, %c0_26], %14 {strides = array<i32>} : memref<10x24x8xbf16, #tpu.memory_space<vmem>>, vector<10x1x8xbf16>,
    %c0_27 = arith.constant 0 : index
    %c0_28 = arith.constant 0 : index
    %c0_29 = arith.constant 0 : index
    %c0_30 = arith.constant 0 : index
    %16 = vector.load %arg1[%c0_27, %c0_28, %c0_29, %c0_30] : memref<1x8x8x4xbf16, #tpu.memory_space<vmem>>, vector<1x8x8x4xbf16>
    %17 = vector.shape_cast %16 : vector<1x8x8x4xbf16> to vector<8x8x4xbf16>
    %c1 = arith.constant 1 : index
    %c8 = arith.constant 8 : index
    %c0_31 = arith.constant 0 : index
    %18 = vector.load %arg7[%c1, %c8, %c0_31] : memref<10x24x4xbf16, #tpu.memory_space<vmem>>, vector<8x8x4xbf16>
    tpu.vector_store %arg7[%c1, %c8, %c0_31], %17 {strides = array<i32>} : memref<10x24x4xbf16, #tpu.memory_space<vmem>>, vector<8x8x4xbf16>,
    %c0_32 = arith.constant 0 : index
    %c0_33 = arith.constant 0 : index
    %c0_34 = arith.constant 0 : index
    %19 = vector.load %arg7[%c0_32, %c0_33, %c0_34] : memref<10x24x4xbf16, #tpu.memory_space<vmem>>, vector<10x24x4xbf16>
    %20 = vector.extract_strided_slice %19 {offsets = [0, 7, 0], sizes = [8, 8, 4], strides = [1, 1, 1]} : vector<10x24x4xbf16> to vector<8x8x4xbf16>
    %21 = vector.shape_cast %20 : vector<8x8x4xbf16> to vector<64x4xbf16>
    %c0_35 = arith.constant 0 : index
    %c0_36 = arith.constant 0 : index
    %c0_37 = arith.constant 0 : index
    %22 = vector.load %arg2[%c0_35, %c0_36, %c0_37] : memref<9x4x8xbf16, #tpu.memory_space<vmem>>, vector<1x4x8xbf16>
    %23 = vector.shape_cast %22 : vector<1x4x8xbf16> to vector<4x8xbf16>
    %cst_38 = arith.constant dense<0.000000e+00> : vector<64x8xf32>
    %24 = tpu.matmul %21, %23, %cst_38 {dimension_numbers = #tpu.dot_dimension_numbers<[1], [0], [0], [1], [0, 0, 1, 1], [], []>} : vector<64x4xbf16>, vector<4x8xbf16>, vector<64x8xf32> -> vector<64x8xf32>
    %25 = vector.extract_strided_slice %19 {offsets = [0, 8, 0], sizes = [8, 8, 4], strides = [1, 1, 1]} : vector<10x24x4xbf16> to vector<8x8x4xbf16>
    %26 = vector.shape_cast %25 : vector<8x8x4xbf16> to vector<64x4xbf16>
    %c1_39 = arith.constant 1 : index
    %c0_40 = arith.constant 0 : index
    %c0_41 = arith.constant 0 : index
    %27 = vector.load %arg2[%c1_39, %c0_40, %c0_41] : memref<9x4x8xbf16, #tpu.memory_space<vmem>>, vector<1x4x8xbf16>
    %28 = vector.shape_cast %27 : vector<1x4x8xbf16> to vector<4x8xbf16>
    %cst_42 = arith.constant dense<0.000000e+00> : vector<64x8xf32>
    %29 = tpu.matmul %26, %28, %cst_42 {dimension_numbers = #tpu.dot_dimension_numbers<[1], [0], [0], [1], [0, 0, 1, 1], [], []>} : vector<64x4xbf16>, vector<4x8xbf16>, vector<64x8xf32> -> vector<64x8xf32>
    %30 = arith.addf %24, %29 : vector<64x8xf32>
    %31 = vector.extract_strided_slice %19 {offsets = [0, 9, 0], sizes = [8, 8, 4], strides = [1, 1, 1]} : vector<10x24x4xbf16> to vector<8x8x4xbf16>
    %32 = vector.shape_cast %31 : vector<8x8x4xbf16> to vector<64x4xbf16>
    %c2 = arith.constant 2 : index
    %c0_43 = arith.constant 0 : index
    %c0_44 = arith.constant 0 : index
    %33 = vector.load %arg2[%c2, %c0_43, %c0_44] : memref<9x4x8xbf16, #tpu.memory_space<vmem>>, vector<1x4x8xbf16>
    %34 = vector.shape_cast %33 : vector<1x4x8xbf16> to vector<4x8xbf16>
    %cst_45 = arith.constant dense<0.000000e+00> : vector<64x8xf32>
    %35 = tpu.matmul %32, %34, %cst_45 {dimension_numbers = #tpu.dot_dimension_numbers<[1], [0], [0], [1], [0, 0, 1, 1], [], []>} : vector<64x4xbf16>, vector<4x8xbf16>, vector<64x8xf32> -> vector<64x8xf32>
    %36 = arith.addf %30, %35 : vector<64x8xf32>
    %37 = vector.extract_strided_slice %19 {offsets = [1, 7, 0], sizes = [8, 8, 4], strides = [1, 1, 1]} : vector<10x24x4xbf16> to vector<8x8x4xbf16>
    %38 = vector.shape_cast %37 : vector<8x8x4xbf16> to vector<64x4xbf16>
    %c3 = arith.constant 3 : index
    %c0_46 = arith.constant 0 : index
    %c0_47 = arith.constant 0 : index
    %39 = vector.load %arg2[%c3, %c0_46, %c0_47] : memref<9x4x8xbf16, #tpu.memory_space<vmem>>, vector<1x4x8xbf16>
    %40 = vector.shape_cast %39 : vector<1x4x8xbf16> to vector<4x8xbf16>
    %cst_48 = arith.constant dense<0.000000e+00> : vector<64x8xf32>
    %41 = tpu.matmul %38, %40, %cst_48 {dimension_numbers = #tpu.dot_dimension_numbers<[1], [0], [0], [1], [0, 0, 1, 1], [], []>} : vector<64x4xbf16>, vector<4x8xbf16>, vector<64x8xf32> -> vector<64x8xf32>
    %42 = arith.addf %36, %41 : vector<64x8xf32>
    %43 = vector.extract_strided_slice %19 {offsets = [1, 8, 0], sizes = [8, 8, 4], strides = [1, 1, 1]} : vector<10x24x4xbf16> to vector<8x8x4xbf16>
    %44 = vector.shape_cast %43 : vector<8x8x4xbf16> to vector<64x4xbf16>
    %c4 = arith.constant 4 : index
    %c0_49 = arith.constant 0 : index
    %c0_50 = arith.constant 0 : index
    %45 = vector.load %arg2[%c4, %c0_49, %c0_50] : memref<9x4x8xbf16, #tpu.memory_space<vmem>>, vector<1x4x8xbf16>
    %46 = vector.shape_cast %45 : vector<1x4x8xbf16> to vector<4x8xbf16>
    %cst_51 = arith.constant dense<0.000000e+00> : vector<64x8xf32>
    %47 = tpu.matmul %44, %46, %cst_51 {dimension_numbers = #tpu.dot_dimension_numbers<[1], [0], [0], [1], [0, 0, 1, 1], [], []>} : vector<64x4xbf16>, vector<4x8xbf16>, vector<64x8xf32> -> vector<64x8xf32>
    %48 = arith.addf %42, %47 : vector<64x8xf32>
    %49 = vector.extract_strided_slice %19 {offsets = [1, 9, 0], sizes = [8, 8, 4], strides = [1, 1, 1]} : vector<10x24x4xbf16> to vector<8x8x4xbf16>
    %50 = vector.shape_cast %49 : vector<8x8x4xbf16> to vector<64x4xbf16>
    %c5 = arith.constant 5 : index
    %c0_52 = arith.constant 0 : index
    %c0_53 = arith.constant 0 : index
    %51 = vector.load %arg2[%c5, %c0_52, %c0_53] : memref<9x4x8xbf16, #tpu.memory_space<vmem>>, vector<1x4x8xbf16>
    %52 = vector.shape_cast %51 : vector<1x4x8xbf16> to vector<4x8xbf16>
    %cst_54 = arith.constant dense<0.000000e+00> : vector<64x8xf32>
    %53 = tpu.matmul %50, %52, %cst_54 {dimension_numbers = #tpu.dot_dimension_numbers<[1], [0], [0], [1], [0, 0, 1, 1], [], []>} : vector<64x4xbf16>, vector<4x8xbf16>, vector<64x8xf32> -> vector<64x8xf32>
    %54 = arith.addf %48, %53 : vector<64x8xf32>
    %55 = vector.extract_strided_slice %19 {offsets = [2, 7, 0], sizes = [8, 8, 4], strides = [1, 1, 1]} : vector<10x24x4xbf16> to vector<8x8x4xbf16>
    %56 = vector.shape_cast %55 : vector<8x8x4xbf16> to vector<64x4xbf16>
    %c6 = arith.constant 6 : index
    %c0_55 = arith.constant 0 : index
    %c0_56 = arith.constant 0 : index
    %57 = vector.load %arg2[%c6, %c0_55, %c0_56] : memref<9x4x8xbf16, #tpu.memory_space<vmem>>, vector<1x4x8xbf16>
    %58 = vector.shape_cast %57 : vector<1x4x8xbf16> to vector<4x8xbf16>
    %cst_57 = arith.constant dense<0.000000e+00> : vector<64x8xf32>
    %59 = tpu.matmul %56, %58, %cst_57 {dimension_numbers = #tpu.dot_dimension_numbers<[1], [0], [0], [1], [0, 0, 1, 1], [], []>} : vector<64x4xbf16>, vector<4x8xbf16>, vector<64x8xf32> -> vector<64x8xf32>
    %60 = arith.addf %54, %59 : vector<64x8xf32>
    %61 = vector.extract_strided_slice %19 {offsets = [2, 8, 0], sizes = [8, 8, 4], strides = [1, 1, 1]} : vector<10x24x4xbf16> to vector<8x8x4xbf16>
    %62 = vector.shape_cast %61 : vector<8x8x4xbf16> to vector<64x4xbf16>
    %c7_58 = arith.constant 7 : index
    %c0_59 = arith.constant 0 : index
    %c0_60 = arith.constant 0 : index
    %63 = vector.load %arg2[%c7_58, %c0_59, %c0_60] : memref<9x4x8xbf16, #tpu.memory_space<vmem>>, vector<1x4x8xbf16>
    %64 = vector.shape_cast %63 : vector<1x4x8xbf16> to vector<4x8xbf16>
    %cst_61 = arith.constant dense<0.000000e+00> : vector<64x8xf32>
    %65 = tpu.matmul %62, %64, %cst_61 {dimension_numbers = #tpu.dot_dimension_numbers<[1], [0], [0], [1], [0, 0, 1, 1], [], []>} : vector<64x4xbf16>, vector<4x8xbf16>, vector<64x8xf32> -> vector<64x8xf32>
    %66 = arith.addf %60, %65 : vector<64x8xf32>
    %67 = vector.extract_strided_slice %19 {offsets = [2, 9, 0], sizes = [8, 8, 4], strides = [1, 1, 1]} : vector<10x24x4xbf16> to vector<8x8x4xbf16>
    %68 = vector.shape_cast %67 : vector<8x8x4xbf16> to vector<64x4xbf16>
    %c8_62 = arith.constant 8 : index
    %c0_63 = arith.constant 0 : index
    %c0_64 = arith.constant 0 : index
    %69 = vector.load %arg2[%c8_62, %c0_63, %c0_64] : memref<9x4x8xbf16, #tpu.memory_space<vmem>>, vector<1x4x8xbf16>
    %70 = vector.shape_cast %69 : vector<1x4x8xbf16> to vector<4x8xbf16>
    %cst_65 = arith.constant dense<0.000000e+00> : vector<64x8xf32>
    %71 = tpu.matmul %68, %70, %cst_65 {dimension_numbers = #tpu.dot_dimension_numbers<[1], [0], [0], [1], [0, 0, 1, 1], [], []>} : vector<64x4xbf16>, vector<4x8xbf16>, vector<64x8xf32> -> vector<64x8xf32>
    %72 = arith.addf %66, %71 : vector<64x8xf32>
    %c0_66 = arith.constant 0 : index
    %c0_67 = arith.constant 0 : index
    %73 = vector.load %arg4[%c0_66, %c0_67] : memref<1x8xf32, #tpu.memory_space<vmem>>, vector<1x8xf32>
    %74 = vector.shape_cast %73 : vector<1x8xf32> to vector<8xf32>
    %75 = vector.shape_cast %74 : vector<8xf32> to vector<1x8xf32>
    %76 = vector.broadcast %75 : vector<1x8xf32> to vector<64x8xf32>
    %77 = arith.addf %72, %76 : vector<64x8xf32>
    %cst_68 = arith.constant 0.000000e+00 : f32
    %78 = vector.broadcast %cst_68 : f32 to vector<64x8xf32>
    %79 = arith.maximumf %77, %78 : vector<64x8xf32>
    %80 = vector.shape_cast %79 : vector<64x8xf32> to vector<8x8x8xf32>
    %81 = arith.truncf %80 : vector<8x8x8xf32> to vector<8x8x8xbf16>
    %c1_69 = arith.constant 1 : index
    %c8_70 = arith.constant 8 : index
    %c0_71 = arith.constant 0 : index
    %82 = vector.load %arg8[%c1_69, %c8_70, %c0_71] : memref<10x24x8xbf16, #tpu.memory_space<vmem>>, vector<8x8x8xbf16>
    tpu.vector_store %arg8[%c1_69, %c8_70, %c0_71], %81 {strides = array<i32>} : memref<10x24x8xbf16, #tpu.memory_space<vmem>>, vector<8x8x8xbf16>,
    %c0_72 = arith.constant 0 : index
    %c0_73 = arith.constant 0 : index
    %c0_74 = arith.constant 0 : index
    %83 = vector.load %arg8[%c0_72, %c0_73, %c0_74] : memref<10x24x8xbf16, #tpu.memory_space<vmem>>, vector<10x24x8xbf16>
    %84 = vector.extract_strided_slice %83 {offsets = [0, 7, 0], sizes = [8, 8, 8], strides = [1, 1, 1]} : vector<10x24x8xbf16> to vector<8x8x8xbf16>
    %85 = vector.shape_cast %84 : vector<8x8x8xbf16> to vector<64x8xbf16>
    %c0_75 = arith.constant 0 : index
    %c0_76 = arith.constant 0 : index
    %c0_77 = arith.constant 0 : index
    %86 = vector.load %arg3[%c0_75, %c0_76, %c0_77] : memref<9x8x8xbf16, #tpu.memory_space<vmem>>, vector<1x8x8xbf16>
    %87 = vector.shape_cast %86 : vector<1x8x8xbf16> to vector<8x8xbf16>
    %cst_78 = arith.constant dense<0.000000e+00> : vector<64x8xf32>
    %88 = tpu.matmul %85, %87, %cst_78 {dimension_numbers = #tpu.dot_dimension_numbers<[1], [0], [0], [1], [0, 0, 1, 1], [], []>} : vector<64x8xbf16>, vector<8x8xbf16>, vector<64x8xf32> -> vector<64x8xf32>
    %89 = vector.extract_strided_slice %83 {offsets = [0, 8, 0], sizes = [8, 8, 8], strides = [1, 1, 1]} : vector<10x24x8xbf16> to vector<8x8x8xbf16>
    %90 = vector.shape_cast %89 : vector<8x8x8xbf16> to vector<64x8xbf16>
    %c1_79 = arith.constant 1 : index
    %c0_80 = arith.constant 0 : index
    %c0_81 = arith.constant 0 : index
    %91 = vector.load %arg3[%c1_79, %c0_80, %c0_81] : memref<9x8x8xbf16, #tpu.memory_space<vmem>>, vector<1x8x8xbf16>
    %92 = vector.shape_cast %91 : vector<1x8x8xbf16> to vector<8x8xbf16>
    %cst_82 = arith.constant dense<0.000000e+00> : vector<64x8xf32>
    %93 = tpu.matmul %90, %92, %cst_82 {dimension_numbers = #tpu.dot_dimension_numbers<[1], [0], [0], [1], [0, 0, 1, 1], [], []>} : vector<64x8xbf16>, vector<8x8xbf16>, vector<64x8xf32> -> vector<64x8xf32>
    %94 = arith.addf %88, %93 : vector<64x8xf32>
    %95 = vector.extract_strided_slice %83 {offsets = [0, 9, 0], sizes = [8, 8, 8], strides = [1, 1, 1]} : vector<10x24x8xbf16> to vector<8x8x8xbf16>
    %96 = vector.shape_cast %95 : vector<8x8x8xbf16> to vector<64x8xbf16>
    %c2_83 = arith.constant 2 : index
    %c0_84 = arith.constant 0 : index
    %c0_85 = arith.constant 0 : index
    %97 = vector.load %arg3[%c2_83, %c0_84, %c0_85] : memref<9x8x8xbf16, #tpu.memory_space<vmem>>, vector<1x8x8xbf16>
    %98 = vector.shape_cast %97 : vector<1x8x8xbf16> to vector<8x8xbf16>
    %cst_86 = arith.constant dense<0.000000e+00> : vector<64x8xf32>
    %99 = tpu.matmul %96, %98, %cst_86 {dimension_numbers = #tpu.dot_dimension_numbers<[1], [0], [0], [1], [0, 0, 1, 1], [], []>} : vector<64x8xbf16>, vector<8x8xbf16>, vector<64x8xf32> -> vector<64x8xf32>
    %100 = arith.addf %94, %99 : vector<64x8xf32>
    %101 = vector.extract_strided_slice %83 {offsets = [1, 7, 0], sizes = [8, 8, 8], strides = [1, 1, 1]} : vector<10x24x8xbf16> to vector<8x8x8xbf16>
    %102 = vector.shape_cast %101 : vector<8x8x8xbf16> to vector<64x8xbf16>
    %c3_87 = arith.constant 3 : index
    %c0_88 = arith.constant 0 : index
    %c0_89 = arith.constant 0 : index
    %103 = vector.load %arg3[%c3_87, %c0_88, %c0_89] : memref<9x8x8xbf16, #tpu.memory_space<vmem>>, vector<1x8x8xbf16>
    %104 = vector.shape_cast %103 : vector<1x8x8xbf16> to vector<8x8xbf16>
    %cst_90 = arith.constant dense<0.000000e+00> : vector<64x8xf32>
    %105 = tpu.matmul %102, %104, %cst_90 {dimension_numbers = #tpu.dot_dimension_numbers<[1], [0], [0], [1], [0, 0, 1, 1], [], []>} : vector<64x8xbf16>, vector<8x8xbf16>, vector<64x8xf32> -> vector<64x8xf32>
    %106 = arith.addf %100, %105 : vector<64x8xf32>
    %107 = vector.extract_strided_slice %83 {offsets = [1, 8, 0], sizes = [8, 8, 8], strides = [1, 1, 1]} : vector<10x24x8xbf16> to vector<8x8x8xbf16>
    %108 = vector.shape_cast %107 : vector<8x8x8xbf16> to vector<64x8xbf16>
    %c4_91 = arith.constant 4 : index
    %c0_92 = arith.constant 0 : index
    %c0_93 = arith.constant 0 : index
    %109 = vector.load %arg3[%c4_91, %c0_92, %c0_93] : memref<9x8x8xbf16, #tpu.memory_space<vmem>>, vector<1x8x8xbf16>
    %110 = vector.shape_cast %109 : vector<1x8x8xbf16> to vector<8x8xbf16>
    %cst_94 = arith.constant dense<0.000000e+00> : vector<64x8xf32>
    %111 = tpu.matmul %108, %110, %cst_94 {dimension_numbers = #tpu.dot_dimension_numbers<[1], [0], [0], [1], [0, 0, 1, 1], [], []>} : vector<64x8xbf16>, vector<8x8xbf16>, vector<64x8xf32> -> vector<64x8xf32>
    %112 = arith.addf %106, %111 : vector<64x8xf32>
    %113 = vector.extract_strided_slice %83 {offsets = [1, 9, 0], sizes = [8, 8, 8], strides = [1, 1, 1]} : vector<10x24x8xbf16> to vector<8x8x8xbf16>
    %114 = vector.shape_cast %113 : vector<8x8x8xbf16> to vector<64x8xbf16>
    %c5_95 = arith.constant 5 : index
    %c0_96 = arith.constant 0 : index
    %c0_97 = arith.constant 0 : index
    %115 = vector.load %arg3[%c5_95, %c0_96, %c0_97] : memref<9x8x8xbf16, #tpu.memory_space<vmem>>, vector<1x8x8xbf16>
    %116 = vector.shape_cast %115 : vector<1x8x8xbf16> to vector<8x8xbf16>
    %cst_98 = arith.constant dense<0.000000e+00> : vector<64x8xf32>
    %117 = tpu.matmul %114, %116, %cst_98 {dimension_numbers = #tpu.dot_dimension_numbers<[1], [0], [0], [1], [0, 0, 1, 1], [], []>} : vector<64x8xbf16>, vector<8x8xbf16>, vector<64x8xf32> -> vector<64x8xf32>
    %118 = arith.addf %112, %117 : vector<64x8xf32>
    %119 = vector.extract_strided_slice %83 {offsets = [2, 7, 0], sizes = [8, 8, 8], strides = [1, 1, 1]} : vector<10x24x8xbf16> to vector<8x8x8xbf16>
    %120 = vector.shape_cast %119 : vector<8x8x8xbf16> to vector<64x8xbf16>
    %c6_99 = arith.constant 6 : index
    %c0_100 = arith.constant 0 : index
    %c0_101 = arith.constant 0 : index
    %121 = vector.load %arg3[%c6_99, %c0_100, %c0_101] : memref<9x8x8xbf16, #tpu.memory_space<vmem>>, vector<1x8x8xbf16>
    %122 = vector.shape_cast %121 : vector<1x8x8xbf16> to vector<8x8xbf16>
    %cst_102 = arith.constant dense<0.000000e+00> : vector<64x8xf32>
    %123 = tpu.matmul %120, %122, %cst_102 {dimension_numbers = #tpu.dot_dimension_numbers<[1], [0], [0], [1], [0, 0, 1, 1], [], []>} : vector<64x8xbf16>, vector<8x8xbf16>, vector<64x8xf32> -> vector<64x8xf32>
    %124 = arith.addf %118, %123 : vector<64x8xf32>
    %125 = vector.extract_strided_slice %83 {offsets = [2, 8, 0], sizes = [8, 8, 8], strides = [1, 1, 1]} : vector<10x24x8xbf16> to vector<8x8x8xbf16>
    %126 = vector.shape_cast %125 : vector<8x8x8xbf16> to vector<64x8xbf16>
    %c7_103 = arith.constant 7 : index
    %c0_104 = arith.constant 0 : index
    %c0_105 = arith.constant 0 : index
    %127 = vector.load %arg3[%c7_103, %c0_104, %c0_105] : memref<9x8x8xbf16, #tpu.memory_space<vmem>>, vector<1x8x8xbf16>
    %128 = vector.shape_cast %127 : vector<1x8x8xbf16> to vector<8x8xbf16>
    %cst_106 = arith.constant dense<0.000000e+00> : vector<64x8xf32>
    %129 = tpu.matmul %126, %128, %cst_106 {dimension_numbers = #tpu.dot_dimension_numbers<[1], [0], [0], [1], [0, 0, 1, 1], [], []>} : vector<64x8xbf16>, vector<8x8xbf16>, vector<64x8xf32> -> vector<64x8xf32>
    %130 = arith.addf %124, %129 : vector<64x8xf32>
    %131 = vector.extract_strided_slice %83 {offsets = [2, 9, 0], sizes = [8, 8, 8], strides = [1, 1, 1]} : vector<10x24x8xbf16> to vector<8x8x8xbf16>
    %132 = vector.shape_cast %131 : vector<8x8x8xbf16> to vector<64x8xbf16>
    %c8_107 = arith.constant 8 : index
    %c0_108 = arith.constant 0 : index
    %c0_109 = arith.constant 0 : index
    %133 = vector.load %arg3[%c8_107, %c0_108, %c0_109] : memref<9x8x8xbf16, #tpu.memory_space<vmem>>, vector<1x8x8xbf16>
    %134 = vector.shape_cast %133 : vector<1x8x8xbf16> to vector<8x8xbf16>
    %cst_110 = arith.constant dense<0.000000e+00> : vector<64x8xf32>
    %135 = tpu.matmul %132, %134, %cst_110 {dimension_numbers = #tpu.dot_dimension_numbers<[1], [0], [0], [1], [0, 0, 1, 1], [], []>} : vector<64x8xbf16>, vector<8x8xbf16>, vector<64x8xf32> -> vector<64x8xf32>
    %136 = arith.addf %130, %135 : vector<64x8xf32>
    %c0_111 = arith.constant 0 : index
    %c0_112 = arith.constant 0 : index
    %137 = vector.load %arg5[%c0_111, %c0_112] : memref<1x8xf32, #tpu.memory_space<vmem>>, vector<1x8xf32>
    %138 = vector.shape_cast %137 : vector<1x8xf32> to vector<8xf32>
    %139 = vector.shape_cast %138 : vector<8xf32> to vector<1x8xf32>
    %140 = vector.broadcast %139 : vector<1x8xf32> to vector<64x8xf32>
    %141 = arith.addf %136, %140 : vector<64x8xf32>
    %cst_113 = arith.constant 0.000000e+00 : f32
    %142 = vector.broadcast %cst_113 : f32 to vector<64x8xf32>
    %143 = arith.maximumf %141, %142 : vector<64x8xf32>
    %144 = arith.truncf %143 : vector<64x8xf32> to vector<64x8xbf16>
    %c0_114 = arith.constant 0 : index
    %c0_115 = arith.constant 0 : index
    %c0_116 = arith.constant 0 : index
    %145 = vector.load %arg6[%c0_114, %c0_115, %c0_116] : memref<1x64x8xbf16, #tpu.memory_space<vmem>>, vector<1x64x8xbf16>
    %146 = vector.shape_cast %145 : vector<1x64x8xbf16> to vector<64x8xbf16>
    %147 = vector.shape_cast %144 : vector<64x8xbf16> to vector<1x64x8xbf16>
    tpu.vector_store %arg6[%c0_114, %c0_115, %c0_116], %147 {strides = array<i32>} : memref<1x64x8xbf16, #tpu.memory_space<vmem>>, vector<1x64x8xbf16>,
    return
  }
  func.func @transform_0(%arg0: i32) -> (i32, i32, i32, i32) {
    %c0_i32 = arith.constant 0 : i32
    %c0_i32_0 = arith.constant 0 : i32
    %c0_i32_1 = arith.constant 0 : i32
    %c0_i32_2 = arith.constant 0 : i32
    return %arg0, %c0_i32, %c0_i32_0, %c0_i32_1 : i32, i32, i32, i32
  }
  func.func @transform_1(%arg0: i32) -> (i32, i32, i32) {
    %c0_i32 = arith.constant 0 : i32
    %c0_i32_0 = arith.constant 0 : i32
    %c0_i32_1 = arith.constant 0 : i32
    %c0_i32_2 = arith.constant 0 : i32
    return %c0_i32, %c0_i32_0, %c0_i32_1 : i32, i32, i32
  }
  func.func @transform_2(%arg0: i32) -> (i32, i32, i32) {
    %c0_i32 = arith.constant 0 : i32
    %c0_i32_0 = arith.constant 0 : i32
    %c0_i32_1 = arith.constant 0 : i32
    %c0_i32_2 = arith.constant 0 : i32
    return %c0_i32, %c0_i32_0, %c0_i32_1 : i32, i32, i32
  }
  func.func @transform_3(%arg0: i32) -> (i32, i32) {
    %c0_i32 = arith.constant 0 : i32
    %c0_i32_0 = arith.constant 0 : i32
    %c0_i32_1 = arith.constant 0 : i32
    return %c0_i32, %c0_i32_0 : i32, i32
  }
  func.func @transform_4(%arg0: i32) -> (i32, i32) {
    %c0_i32 = arith.constant 0 : i32
    %c0_i32_0 = arith.constant 0 : i32
    %c0_i32_1 = arith.constant 0 : i32
    return %c0_i32, %c0_i32_0 : i32, i32
  }
  func.func @transform_5(%arg0: i32) -> (i32, i32, i32) {
    %c0_i32 = arith.constant 0 : i32
    %c0_i32_0 = arith.constant 0 : i32
    %c0_i32_1 = arith.constant 0 : i32
    return %arg0, %c0_i32, %c0_i32_0 : i32, i32, i32
  }
}

</mosaic_0001>

<bundles_post_ra>
// kernel: tpu_custom_call.1
= control target key start
LH: loop header
LB: loop body
LE: loop exit
PB: predicated region body
PF: predicated region fallthrough
CT: control target
= control target key end

     0   :  { %s2217_s18 = smov 0   ;;  %s3154_s0 = inlined_call_operand.vmem [shape: bf16[2,8,8,4], index: 0, kind: input, shape index: {}]   ;;  %s3155_s1 = inlined_call_operand.vmem [shape: bf16[9,4,8], index: 1, kind: input, shape index: {}]   ;;  %s3156_s2 = inlined_call_operand.vmem [shape: bf16[9,8,8], index: 2, kind: input, shape index: {}]   ;;  %s3157_s3 = inlined_call_operand.vmem [shape: f32[1,8], index: 3, kind: input, shape index: {}]   ;;  %s3158_s4 = inlined_call_operand.vmem [shape: f32[1,8], index: 4, kind: input, shape index: {}]   ;;  %s3159_s5 = inlined_call_operand.vmem [shape: bf16[2,64,8], index: 5, kind: output, shape index: {}]  }
   0x1 LB: > { %s2044_s19 = sadd.s32 4294967295, %s2184_s18   ;;  %p2048_p0 = scmp.ge.s32.totalorder %s2184_s18, 1  ;;  %s2184_s18 = sphi %s2217_s18, %s15_s18  }
   0x2   : > { %p187_p1 = scmp.lt.s32.totalorder %s2184_s18, 3 }
   0x4   : > { %p188_p2 = pnand %p2048_p0, %p187_p1 }
   0x5   : > { %p215_p3 = scmp.lt.s32.totalorder (!%p188_p2), %s2044_s19, 1 }
   0x6   : > { %191 = sbr.rel (%p188_p2) target bundleno = 610 (0x262), region = 40 }
   0xb   : > { %v2061_v0 = vld [vmem:[%s3155_s1 + $0x2] sm:$0x3]  ;;  %vm561_vm0 = vcmask 1041408   ;;  %vm226_vm1 = vcmask 27648   ;;  %v525_v2 = vld [vmem:[%s3155_s1] sm:$0x3] }
   0xc   : > { %v563_v1 = vsel %vm561_vm0, %v2061_v0, 0  ;;  %v2070_v3 = vld [vmem:[%s3155_s1 + $0x4] sm:$0x3]  ;;  %s3173_s19 = smov (!%p215_p3, %s2044_s19), 1  ;;  %v619_v4 = vsel %vm561_vm0, %v525_v2, 0  ;;  %v2186_v6 = vmov 0  }
   0xd   : > { %2165 = vmatpush.bf16.msra.mxu2 %v563_v1  ;;  %572 = vmatpush.bf16.msra.mxu0 %v563_v1  ;;  %v752_v5 = vsel %vm561_vm0, %v2070_v3, 0  ;;  %228 = vst.msk [vmem:[#allocation2 + $0x4] sm:$0xf] %vm226_vm1, %v2186_v6  ;;  %vm234_vm2 = vcmask 27651   ;;  %vm235_vm3 = vsmask.f32 7950 }
   0xe   : > { %2166 = vmatpush.bf16.msra.mxu3 %v619_v4  ;;  %628 = vmatpush.bf16.msra.mxu1 %v619_v4  ;;  %227 = vst.msk [vmem:[#allocation2] sm:$0xf] %vm226_vm1, %v2186_v6  ;;  %s2163_s26 = sshll.u32 %s3173_s19, 5  ;;  %vm2256_vm4 = vmand %vm234_vm2, %vm235_vm3  ;;  %v249_v8 = vld [vmem:[#allocation2 + $0x30] sm:$0x8]  ;;  %vm548_vm7 = vcmask 31744  }
   0xf   : > { %229 = vst.msk [vmem:[#allocation2 + $0x8] sm:$0xf] %vm226_vm1, %v2186_v6  ;;  %s2251_s29 = scalar_lea.vmem %s3154_s0, %s2163_s26  ;;  %v252_v9 = vld [vmem:[#allocation2 + $0x3c] sm:$0x8]  ;;  %v2076_v13 = vld [vmem:[%s3155_s1 + $0x6] sm:$0x3]  ;;  %s3105_s21 = scalar_lea.vmem %s3159_s5, %s2163_s26 }
  0x10   : > { %231 = vst.msk [vmem:[#allocation2 + $0x6c] sm:$0xf] %vm226_vm1, %v2186_v6  ;;  %v375_v10 = vld [vmem:[%s2251_s29 + $0xc] sm:$0xf]  ;;  %v376_v11 = vld [vmem:[%s2251_s29 + $0x10] sm:$0xf] }
  0x11   : > { %761 = vmatpush.bf16.msrb.mxu2 %v752_v5  ;;  %v372_v12 = vld [vmem:[%s2251_s29] sm:$0xf]  ;;  %384 = vst.msk [vmem:[#allocation2 + $0x34] sm:$0xf] %vm226_vm1, %v375_v10  ;;  %v824_v14 = vsel %vm561_vm0, %v2076_v13, 0  ;;  %v250_v15 = vsel %vm2256_vm4, 0, %v249_v8 }
  0x12   : > { %385 = vst.msk [vmem:[#allocation2 + $0x40] sm:$0xf] %vm226_vm1, %v376_v11  ;;  %v253_v16 = vsel %vm2256_vm4, 0, %v252_v9  ;;  %833 = vmatpush.bf16.msrb.mxu3 %v824_v14  ;;  %v240_v17 = vld [vmem:[#allocation2 + $0xc] sm:$0x8]  ;;  %vm267_vm9 = vcmask 24576  }
  0x13   : > { %381 = vst.msk [vmem:[#allocation2 + $0x10] sm:$0xf] %vm226_vm1, %v372_v12  ;;  %vm268_vm5 = vsmask.f32 256  ;;  %v2081_v21 = vld [vmem:[%s3155_s1 + $0x8] sm:$0x3] }
  0x14   : > { %v2274_v18 = vld [vmem:[#allocation2 + $0x4] sm:$0xf]  ;;  %232 = vst.msk [vmem:[#allocation2 + $0x70] sm:$0xf] %vm226_vm1, %v2186_v6  ;;  %vm419_vm6 = vsmask.f32 4368  ;;  %vm2381_vm10 = vmand %vm267_vm9, %vm268_vm5 }
  0x15   : > { %v237_v19 = vld [vmem:[#allocation2] sm:$0x8]  ;;  %233 = vst.msk [vmem:[#allocation2 + $0x74] sm:$0xf] %vm226_vm1, %v2186_v6  ;;  %v241_v22 = vsel %vm2256_vm4, 0, %v240_v17  ;;  %v884_v23 = vsel %vm561_vm0, %v2081_v21, 0  ;;  %v536_v39 = vunpack.c.l.b16 %v2274_v18  ;;  %vm2331_vm8 = vmor %vm268_vm5, %vm419_vm6 }
  0x16   : > { %v238_v20 = vsel %vm2256_vm4, 0, %v237_v19  ;;  %251 = vst [vmem:[#allocation2 + $0x30] sm:$0x8] %v250_v15  ;;  %v427_v24 = vshrl.u32 %v2274_v18, 16  ;;  %893 = vmatpush.bf16.msrb.mxu0 %v884_v23  ;;  %v377_v25 = vld [vmem:[%s2251_s29 + $0x14] sm:$0xf] }
  0x17   : > { %254 = vst [vmem:[#allocation2 + $0x3c] sm:$0x8] %v253_v16  ;;  %v378_v27 = vld [vmem:[%s2251_s29 + $0x18] sm:$0xf]  ;;  %v373_v31 = vld [vmem:[%s2251_s29 + $0x4] sm:$0xf] }
  0x18   : > { %v2290_v26 = vld [vmem:[#allocation2 + $0x34] sm:$0xf]  ;;  %239 = vst [vmem:[#allocation2] sm:$0x8] %v238_v20  ;;  %v429_v42 = vrot.slane %v427_v24, 7  ;;  %v430_v43 = vshll.u32 %v2274_v18, 16 }
  0x19   : > { %v2293_v28 = vld [vmem:[#allocation2 + $0x40] sm:$0xf]  ;;  %v479_v29 = vshrl.u32 %v2290_v26, 16  ;;  %v540_v30 = vunpack.c.l.b16 %v2290_v26  ;;  %242 = vst [vmem:[#allocation2 + $0xc] sm:$0x8] %v241_v22  ;;  %v482_v32 = vshll.u32 %v2290_v26, 16 }
  0x1a   : > { %v492_v33 = vshrl.u32 %v2293_v28, 16  ;;  %v541_v34 = vunpack.c.l.b16 %v2293_v28  ;;  %v2301_v35 = vld [vmem:[#allocation2 + $0x10] sm:$0xf]  ;;  %386 = vst.msk [vmem:[#allocation2 + $0x4c] sm:$0xf] %vm226_vm1, %v377_v25  ;;  %v495_v37 = vshll.u32 %v2293_v28, 16  ;;  %v432_v60 = vor.u32 %v430_v43, %v429_v42 }
  0x1b   : > { %v481_v36 = vrot.slane %v479_v29, 7  ;;  %v440_v38 = vshrl.u32 %v2301_v35, 16  ;;  %387 = vst.msk [vmem:[#allocation2 + $0x58] sm:$0xf] %vm226_vm1, %v378_v27  ;;  %v374_v44 = vld [vmem:[%s2251_s29 + $0x8] sm:$0xf]  ;;  %v537_v47 = vunpack.c.l.b16 %v2301_v35 }
  0x1c   : > { %v494_v40 = vrot.slane %v492_v33, 7  ;;  %v2316_v41 = vpack.c.b16 %v541_v34, %v540_v30  ;;  %v443_v46 = vshll.u32 %v2301_v35, 16  ;;  %382 = vst.msk [vmem:[#allocation2 + $0x1c] sm:$0xf] %vm226_vm1, %v373_v31  ;;  %v255_v61 = vld [vmem:[#allocation2 + $0x48] sm:$0x8] }
  0x1d   : > { %v442_v45 = vrot.slane %v440_v38, 7  ;;  %v401_v48 = vld [vmem:[#allocation2 + $0x30] sm:$0xf]  ;;  %v484_v51 = vor.u32 %v482_v32, %v481_v36  ;;  %v544_v52 = vpack.c.b16 %v537_v47, %v536_v39  ;;  %383 = vst.msk [vmem:[#allocation2 + $0x28] sm:$0xf] %vm226_vm1, %v374_v44  ;;  %v256_v2 = vsel %vm2256_vm4, 0, %v255_v61 }
  0x1e   : > { %2064 = vmatmul.msk.bf16.vlgmr.msra.gmra.mxu2 %vm548_vm7, %v2316_v41  ;;  %v404_v49 = vld [vmem:[#allocation2 + $0x3c] sm:$0xf]  ;;  %v474_v50 = vshrl.u32 %v401_v48, 16  ;;  %v497_v55 = vor.u32 %v495_v37, %v494_v40  ;;  %257 = vst [vmem:[#allocation2 + $0x48] sm:$0x8] %v256_v2  ;;  %v2352_v12 = vrot.slane %v427_v24, 4 }
  0x1f   : > { %v487_v54 = vshrl.u32 %v404_v49, 16  ;;  %v389_v56 = vld [vmem:[#allocation2] sm:$0xf]  ;;  %2062 = vmatmul.msk.bf16.vlgmr.msra.gmra.mxu0 %vm548_vm7, %v544_v52  ;;  %v445_v0 = vor.u32 %v443_v46, %v442_v45  ;;  %v2354_v13 = vrot.slane %v430_v43, 5  ;;  %v2360_v16 = vrot.slane %v440_v38, 4 }
  0x20   : > { %v2057_v57 = vrot.slane %v474_v50, 11  ;;  %v392_v58 = vld [vmem:[#allocation2 + $0xc] sm:$0xf]  ;;  %v422_v59 = vshrl.u32 %v389_v56, 16  ;;  %v2362_v17 = vrot.slane %v443_v46, 5  ;;  %vm1362_vm14 = vcmask 1043456  }
  0x21   : > { %v2058_v62 = vrot.slane %v487_v54, 11  ;;  %v435_v63 = vshrl.u32 %v392_v58, 16  ;;  %v2339_v1 = vld [vmem:[#allocation2 + $0x4c] sm:$0xf]  ;;  %v258_v36 = vld [vmem:[#allocation2 + $0x54] sm:$0x8] }
  0x22   : > { %v485_v3 = vsel %vm2331_vm8, %v2057_v57, %v484_v51  ;;  %v2053_v4 = vrot.slane %v422_v59, 11  ;;  %v2349_v10 = vld [vmem:[#allocation2 + $0x58] sm:$0xf]  ;;  %v505_v11 = vshrl.u32 %v2339_v1, 16  ;;  %v542_v22 = vunpack.c.l.b16 %v2339_v1  ;;  %v246_v46 = vld [vmem:[#allocation2 + $0x24] sm:$0x8] }
  0x23   : > { %v498_v5 = vsel %vm2331_vm8, %v2058_v62, %v497_v55  ;;  %v2347_v8 = vunpack.c.l.b16 %v485_v3  ;;  %v2054_v9 = vrot.slane %v435_v63, 11  ;;  %v543_v23 = vunpack.c.l.b16 %v2349_v10  ;;  %v2388_v40 = vld [vmem:[#allocation2 + $0x1c] sm:$0xf]  ;;  %v243_v43 = vld [vmem:[#allocation2 + $0x18] sm:$0x8] }
  0x24   : > { %v2356_v14 = vunpack.c.l.b16 %v498_v5  ;;  %v433_v15 = vsel %vm2331_vm8, %v2053_v4, %v432_v60  ;;  %v507_v24 = vrot.slane %v505_v11, 7  ;;  %v508_v25 = vshll.u32 %v2339_v1, 16  ;;  %v2390_v42 = vld [vmem:[#allocation2 + $0x28] sm:$0xf]  ;;  %v273_v51 = vld [vmem:[#allocation2 + $0x14] sm:$0x1] }
  0x25   : > { %v446_v18 = vsel %vm2331_vm8, %v2054_v9, %v445_v0  ;;  %v594_v19 = vunpack.c.l.b16 %v433_v15  ;;  %v518_v27 = vshrl.u32 %v2349_v10, 16  ;;  %v521_v31 = vshll.u32 %v2349_v10, 16  ;;  %v407_v49 = vld [vmem:[#allocation2 + $0x48] sm:$0xf]  ;;  %v2092_v57 = vld [vmem:[%s3155_s1 + $0xc] sm:$0x3] }
  0x26   : > { %v2368_v20 = vpack.c.b16 %v2356_v14, %v2347_v8  ;;  %v2370_v21 = vunpack.c.l.b16 %v446_v18  ;;  %v538_v44 = vunpack.c.l.b16 %v2388_v40  ;;  %v539_v45 = vunpack.c.l.b16 %v2390_v42  ;;  %v270_v50 = vld [vmem:[#allocation2 + $0x8] sm:$0x1]  ;;  %v276_v60 = vld [vmem:[#allocation2 + $0x20] sm:$0x1]  ;;  %v2097_v0 = vld [vmem:[%s3155_s1 + $0xe] sm:$0x3] }
  0x27   : > { %v2399_v48 = vpack.c.b16 %v543_v23, %v542_v22  ;;  %v520_v52 = vrot.slane %v518_v27, 7  ;;  %v453_v54 = vshrl.u32 %v2388_v40, 16  ;;  %v259_v55 = vsel %vm2256_vm4, 0, %v258_v36  ;;  %v279_v4 = vld [vmem:[#allocation2 + $0x2c] sm:$0x1] }
  0x28   : > { %2068 = vmatmul.msk.bf16.vlgmr.msra.gmra.mxu3 %vm548_vm7, %v2368_v20  ;;  %v602_v39 = vpack.c.b16 %v2370_v21, %v594_v19  ;;  %v500_v56 = vshrl.u32 %v407_v49, 16  ;;  %260 = vst [vmem:[#allocation2 + $0x54] sm:$0x8] %v259_v55  ;;  %v244_v58 = vsel %vm2256_vm4, 0, %v243_v43  ;;  %v247_v59 = vsel %vm2256_vm4, 0, %v246_v46 }
  0x29   : > { %v456_v61 = vshll.u32 %v2388_v40, 16  ;;  %v2418_v62 = vpack.c.b16 %v539_v45, %v538_v44  ;;  %245 = vst [vmem:[#allocation2 + $0x18] sm:$0x8] %v244_v58  ;;  %v271_v63 = vsel %vm2381_vm10, 0, %v270_v50  ;;  %v466_v2 = vshrl.u32 %v2390_v42, 16 }
  0x2a   : > { %2066 = vmatmul.msk.bf16.vlgmr.msra.gmra.mxu1 %vm548_vm7, %v602_v39  ;;  %248 = vst [vmem:[#allocation2 + $0x24] sm:$0x8] %v247_v59  ;;  %v274_v3 = vsel %vm2381_vm10, 0, %v273_v51  ;;  %v455_v5 = vrot.slane %v453_v54, 7  ;;  %v469_v9 = vshll.u32 %v2390_v42, 16  ;;  %v2059_v15 = vrot.slane %v500_v56, 11 }
  0x2b   : > { %272 = vst [vmem:[#allocation2 + $0x8] sm:$0x1] %v271_v63  ;;  %v1012_v18 = vsel %vm561_vm0, %v2092_v57, 0  ;;  %v655_v19 = vor.u32 %v2354_v13, %v2352_v12  ;;  %v510_v36 = vor.u32 %v508_v25, %v507_v24  ;;  %v1060_v39 = vsel %vm561_vm0, %v2097_v0, 0  ;;  %v2086_v43 = vld [vmem:[%s3155_s1 + $0xa] sm:$0x3] }
  0x2c   : > { %275 = vst [vmem:[#allocation2 + $0x14] sm:$0x1] %v274_v3  ;;  %1021 = vmatpush.bf16.msra.mxu2 %v1012_v18  ;;  %v277_v46 = vsel %vm2381_vm10, 0, %v276_v60  ;;  %1069 = vmatpush.bf16.msra.mxu3 %v1060_v39  ;;  %v952_v12 = vsel %vm561_vm0, %v2086_v43, 0  ;;  %v2102_v13 = vld [vmem:[%s3155_s1 + $0x10] sm:$0x3]  ;;  %v664_v56 = vor.u32 %v2362_v17, %v2360_v16  ;;  %v523_v60 = vor.u32 %v521_v31, %v520_v52 }
  0x2d   : > { %278 = vst [vmem:[#allocation2 + $0x20] sm:$0x1] %v277_v46  ;;  %v280_v24 = vsel %vm2381_vm10, 0, %v279_v4  ;;  %v468_v49 = vrot.slane %v466_v2, 7  ;;  %v671_v50 = vrot.slane %v453_v54, 4  ;;  %v672_v51 = vrot.slane %v456_v61, 5  ;;  %961 = vmatpush.bf16.msrb.mxu1 %v952_v12 }
  0x2e   : > { %2065 = vmatmul.msk.bf16.gmra.mxu2 %vm548_vm7, %v2399_v48  ;;  %v1116_v55 = vsel %vm561_vm0, %v2102_v13, 0  ;;  %281 = vst [vmem:[#allocation2 + $0x2c] sm:$0x1] %v280_v24  ;;  %vm650_vm11 = vsmask.f32 3328  ;;  %v511_v58 = vsel %vm2331_vm8, %v2059_v15, %v510_v36  ;;  %v656_v63 = vrot.slane %v655_v19, 4 }
  0x2f   : > { %2063 = vmatmul.msk.bf16.gmra.mxu0 %vm548_vm7, %v2418_v62  ;;  %v410_v57 = vld [vmem:[#allocation2 + $0x54] sm:$0xf]  ;;  %vm651_vm12 = vsmask.f32 7440  ;;  %v282_v0 = vld [vmem:[#allocation2 + $0x38] sm:$0x1]  ;;  %v458_v18 = vor.u32 %v456_v61, %v455_v5  ;;  %v471_v46 = vor.u32 %v469_v9, %v468_v49  ;;  %v2459_v15 = vunpack.c.l.b16 %v511_v58 }
  0x30   : > { %1125 = vmatpush.bf16.msra.mxu0 %v1116_v55  ;;  %v513_v59 = vshrl.u32 %v410_v57, 16  ;;  %v395_v54 = vld [vmem:[#allocation2 + $0x18] sm:$0xf]  ;;  %v283_v16 = vsel %vm2381_vm10, 0, %v282_v0  ;;  %v285_v17 = vld [vmem:[#allocation2 + $0x44] sm:$0x1]  ;;  %vm2467_vm13 = vmor %vm650_vm11, %vm651_vm12 }
  0x31   : > { %v398_v3 = vld [vmem:[#allocation2 + $0x24] sm:$0xf]  ;;  %v448_v4 = vshrl.u32 %v395_v54, 16  ;;  %284 = vst [vmem:[#allocation2 + $0x38] sm:$0x1] %v283_v16  ;;  %v286_v19 = vsel %vm2381_vm10, 0, %v285_v17 }
  0x32   : > { %v2060_v39 = vrot.slane %v513_v59, 11  ;;  %v461_v43 = vshrl.u32 %v398_v3, 16  ;;  %v391_v12 = vld [vmem:[#allocation2 + $0x8] sm:$0xf]  ;;  %v665_v49 = vrot.slane %v664_v56, 4  ;;  %v680_v57 = vrot.slane %v466_v2, 4 }
  0x33   : > { %v2055_v36 = vrot.slane %v448_v4, 11  ;;  %v394_v13 = vld [vmem:[#allocation2 + $0x14] sm:$0xf]  ;;  %v658_v52 = vshll.u32 %v391_v12, 16  ;;  %287 = vst [vmem:[#allocation2 + $0x44] sm:$0x1] %v286_v19 }
  0x34   : > { %v524_v61 = vsel %vm2331_vm8, %v2060_v39, %v523_v60  ;;  %v2056_v5 = vrot.slane %v461_v43, 11  ;;  %v667_v55 = vshll.u32 %v394_v13, 16  ;;  %v397_v0 = vld [vmem:[#allocation2 + $0x20] sm:$0xf]  ;;  %v681_v3 = vrot.slane %v469_v9, 5 }
  0x35   : > { %v2471_v58 = vunpack.c.l.b16 %v524_v61  ;;  %v459_v59 = vsel %vm2331_vm8, %v2055_v36, %v458_v18  ;;  %v660_v54 = vrot.slane %v658_v52, 5  ;;  %v400_v39 = vld [vmem:[#allocation2 + $0x2c] sm:$0xf]  ;;  %v673_v9 = vor.u32 %v672_v51, %v671_v50  ;;  %v288_v40 = vld [vmem:[#allocation2 + $0x50] sm:$0x1] }
  0x36   : > { %v472_v60 = vsel %vm2331_vm8, %v2056_v5, %v471_v46  ;;  %v596_v4 = vunpack.c.l.b16 %v459_v59  ;;  %v669_v16 = vrot.slane %v667_v55, 5  ;;  %v676_v12 = vshll.u32 %v397_v0, 16 }
  0x37   : > { %v2479_v17 = vpack.c.b16 %v2471_v58, %v2459_v15  ;;  %v2481_v56 = vunpack.c.l.b16 %v472_v60  ;;  %v661_v2 = vsel %vm2467_vm13, %v656_v63, %v660_v54  ;;  %v867_v13 = vpack.c.b16 %v538_v44, %v537_v47  ;;  %v291_v47 = vld [vmem:[#allocation2 + $0x5c] sm:$0x1] }
  0x38   : > { %v670_v18 = vsel %vm2467_vm13, %v665_v49, %v669_v16  ;;  %v727_v43 = vunpack.c.l.b16 %v661_v2  ;;  %v682_v63 = vor.u32 %v681_v3, %v680_v57  ;;  %v685_v52 = vshll.u32 %v400_v39, 16  ;;  %v403_v60 = vld [vmem:[#allocation2 + $0x38] sm:$0xf]  ;;  %v379_v39 = vld [vmem:[%s2251_s29 + $0x1c] sm:$0xf] }
  0x39   : > { %2069 = vmatmul.msk.bf16.gmra.mxu3 %vm548_vm7, %v2479_v17  ;;  %v2490_v46 = vpack.c.b16 %v2481_v56, %v596_v4  ;;  %v728_v36 = vunpack.c.l.b16 %v670_v18  ;;  %v674_v50 = vrot.slane %v673_v9, 4  ;;  %v678_v51 = vrot.slane %v676_v12, 5  ;;  %v261_v9 = vld [vmem:[#allocation2 + $0x60] sm:$0x8]  ;;  %388 = vst.msk [vmem:[#allocation2 + $0x64] sm:$0xf] %vm226_vm1, %v379_v39 }
  0x3a   : > { %v683_v61 = vrot.slane %v682_v63, 4  ;;  %v687_v5 = vrot.slane %v685_v52, 5  ;;  %v289_v44 = vsel %vm2381_vm10, 0, %v288_v40  ;;  %v292_v49 = vsel %vm2381_vm10, 0, %v291_v47 }
  0x3b   : > { %2067 = vmatmul.msk.bf16.gmra.mxu1 %vm548_vm7, %v2490_v46  ;;  %v735_v19 = vpack.c.b16 %v728_v36, %v727_v43  ;;  %v679_v35 = vsel %vm2467_vm13, %v674_v50, %v678_v51  ;;  %290 = vst [vmem:[#allocation2 + $0x50] sm:$0x1] %v289_v44  ;;  %v689_v59 = vrot.slane %v479_v29, 4  ;;  %v690_v54 = vrot.slane %v482_v32, 5  ;;  %v406_v43 = vld [vmem:[#allocation2 + $0x44] sm:$0xf] }
  0x3c   : > { %v688_v55 = vsel %vm2467_vm13, %v683_v61, %v687_v5  ;;  %v729_v57 = vunpack.c.l.b16 %v679_v35  ;;  %293 = vst [vmem:[#allocation2 + $0x5c] sm:$0x1] %v292_v49  ;;  %v807_v0 = vpack.c.b16 %v596_v4, %v2370_v21  ;;  %v698_v16 = vrot.slane %v492_v33, 4 }
  0x3d   : > { %v730_v3 = vunpack.c.l.b16 %v688_v55  ;;  %v699_v2 = vrot.slane %v495_v37, 5  ;;  %v691_v29 = vor.u32 %v690_v54, %v689_v59  ;;  %v694_v12 = vshll.u32 %v403_v60, 16 }
  0x3e   : > { %2071 = vmatmul.msk.bf16.vlgmr.msrb.gmra.mxu2 %vm548_vm7, %v735_v19  ;;  %v935_v18 = vpack.c.b16 %v729_v57, %v728_v36  ;;  %v262_v32 = vsel %vm2256_vm4, 0, %v261_v9  ;;  %v868_v33 = vpack.c.b16 %v540_v30, %v539_v45  ;;  %v703_v4 = vshll.u32 %v406_v43, 16  ;;  %v294_v19 = vld [vmem:[#allocation2 + $0x68] sm:$0x1] }
  0x3f   : > { %2082 = vmatmul.msk.bf16.vlgmr.msrb.gmra.mxu0 %vm548_vm7, %v867_v13  ;;  %v2522_v21 = vpack.c.b16 %v730_v3, %v729_v57  ;;  %263 = vst [vmem:[#allocation2 + $0x60] sm:$0x8] %v262_v32  ;;  %v700_v37 = vor.u32 %v699_v2, %v698_v16  ;;  %v692_v36 = vrot.slane %v691_v29, 4  ;;  %v696_v13 = vrot.slane %v694_v12, 5 }
  0x40   : > { %v705_v52 = vrot.slane %v703_v4, 5  ;;  %v295_v30 = vsel %vm2381_vm10, 0, %v294_v19  ;;  %v707_v50 = vrot.slane %v505_v11, 4  ;;  %v708_v51 = vrot.slane %v508_v25, 5 }
  0x41   : > { %v701_v63 = vrot.slane %v700_v37, 4  ;;  %v697_v42 = vsel %vm2467_vm13, %v692_v36, %v696_v13  ;;  %296 = vst [vmem:[#allocation2 + $0x68] sm:$0x1] %v295_v30  ;;  %v808_v61 = vpack.c.b16 %v2347_v8, %v2481_v56  ;;  %v716_v40 = vrot.slane %v518_v27, 4  ;;  %v264_v30 = vld [vmem:[#allocation2 + $0x6c] sm:$0x8] }
  0x42   : > { %v731_v45 = vunpack.c.l.b16 %v697_v42  ;;  %v409_v35 = vld [vmem:[#allocation2 + $0x50] sm:$0xf]  ;;  %v717_v47 = vrot.slane %v521_v31, 5  ;;  %v709_v55 = vor.u32 %v708_v51, %v707_v50  ;;  %v869_v8 = vpack.c.b16 %v542_v22, %v541_v34  ;;  %v297_v50 = vld [vmem:[#allocation2 + $0x74] sm:$0x1] }
  0x43   : > { %v706_v26 = vsel %vm2467_vm13, %v701_v63, %v705_v52  ;;  %v412_v49 = vld [vmem:[#allocation2 + $0x5c] sm:$0xf]  ;;  %v712_v57 = vshll.u32 %v409_v35, 16  ;;  %v809_v39 = vpack.c.b16 %v2459_v15, %v2356_v14  ;;  %vm300_vm15 = vcmask 60416  }
  0x44   : > { %v732_v5 = vunpack.c.l.b16 %v706_v26  ;;  %v936_v44 = vpack.c.b16 %v731_v45, %v730_v3  ;;  %v718_v25 = vor.u32 %v717_v47, %v716_v40  ;;  %v721_v56 = vshll.u32 %v412_v49, 16  ;;  %301 = vst.msk [vmem:[#allocation3] sm:$0xf] %vm300_vm15, %v2186_v6 }
  0x45   : > { %v710_v27 = vrot.slane %v709_v55, 4  ;;  %v714_v59 = vrot.slane %v712_v57, 5  ;;  %302 = vst.msk [vmem:[#allocation3 + $0x4] sm:$0xf] %vm300_vm15, %v2186_v6  ;;  %vm308_vm0 = vcmask 60419   ;;  %vm340_vm2 = vcmask 57344  }
  0x46   : > { %v737_v11 = vpack.c.b16 %v732_v5, %v731_v45  ;;  %v719_v31 = vrot.slane %v718_v25, 4  ;;  %v723_v54 = vrot.slane %v721_v56, 5  ;;  %v413_v60 = vld [vmem:[#allocation2 + $0x60] sm:$0xf]  ;;  %v265_v45 = vsel %vm2256_vm4, 0, %v264_v30  ;;  %vm2688_vm1 = vmand %vm308_vm0, %vm235_vm3 }
  0x47   : > { %v715_v28 = vsel %vm2467_vm13, %v710_v27, %v714_v59  ;;  %v792_v29 = vshrl.u32 %v413_v60, 16  ;;  %266 = vst [vmem:[#allocation2 + $0x6c] sm:$0x8] %v265_v45  ;;  %vm2701_vm3 = vmand %vm340_vm2, %vm268_vm5  ;;  %vm1349_vm4 = vcmask 64512  }
  0x48   : > { %v724_v34 = vsel %vm2467_vm13, %v719_v31, %v723_v54  ;;  %v733_v3 = vunpack.c.l.b16 %v715_v28  ;;  %v415_v9 = vld [vmem:[#allocation2 + $0x68] sm:$0xf]  ;;  %303 = vst.msk [vmem:[#allocation3 + $0x8] sm:$0xf] %vm300_vm15, %v2186_v6 }
  0x49   : > { %2077 = vmatmul.msk.bf16.vlgmr.msrb.gmra.mxu3 %vm548_vm7, %v807_v0  ;;  %v2556_v0 = vld [vmem:[#allocation2 + $0x64] sm:$0xf]  ;;  %v928_v37 = vshll.u32 %v415_v9, 16  ;;  %v2075_v13 = vrot.slane %v792_v29, 11  ;;  %305 = vst.msk [vmem:[#allocation3 + $0x6c] sm:$0xf] %vm300_vm15, %v2186_v6 }
  0x4a   : > { %v797_v1 = vshrl.u32 %v2556_v0, 16  ;;  %v800_v22 = vshll.u32 %v2556_v0, 16  ;;  %v866_v43 = vunpack.c.l.b16 %v2556_v0  ;;  %v937_v32 = vpack.c.b16 %v733_v3, %v732_v5  ;;  %v2115_v29 = vld [vmem:[%s3156_s2 + $0x4] sm:$0xf]  ;;  %306 = vst.msk [vmem:[#allocation3 + $0x70] sm:$0xf] %vm300_vm15, %v2186_v6 }
  0x4b   : > { %2087 = vmatmul.msk.bf16.vlgmr.msrb.gmra.mxu1 %vm548_vm7, %v935_v18  ;;  %v734_v18 = vunpack.c.l.b16 %v724_v34  ;;  %v930_v15 = vrot.slane %v928_v37, 5  ;;  %v1364_v0 = vsel %vm1362_vm14, %v2115_v29, 0  ;;  %307 = vst.msk [vmem:[#allocation3 + $0x74] sm:$0xf] %vm300_vm15, %v2186_v6 }
  0x4c   : > { %v923_v16 = vrot.slane %v797_v1, 4  ;;  %v924_v2 = vrot.slane %v800_v22, 5  ;;  %v799_v12 = vrot.slane %v797_v1, 7  ;;  %v870_v36 = vpack.c.b16 %v866_v43, %v543_v23  ;;  %1373 = vmatpush.bf16.msra.mxu1 %v1364_v0 }
  0x4d   : > { %v738_v4 = vpack.c.b16 %v734_v18, %v733_v3 }
  0x4e   : > { %2072 = vmatmul.msk.bf16.gmra.mxu2 %vm548_vm7, %v2522_v21  ;;  %v802_v63 = vor.u32 %v800_v22, %v799_v12  ;;  %v416_v5 = vld [vmem:[#allocation2 + $0x6c] sm:$0xf] }
  0x4f   : > { %2083 = vmatmul.msk.bf16.gmra.mxu0 %vm548_vm7, %v868_v33  ;;  %v925_v33 = vor.u32 %v924_v2, %v923_v16  ;;  %v992_v40 = vshrl.u32 %v416_v5, 16 }
  0x50   : > { %v803_v52 = vsel %vm2331_vm8, %v2075_v13, %v802_v63 }
  0x51   : > { %v926_v14 = vrot.slane %v925_v33, 4  ;;  %v806_v10 = vunpack.c.l.b16 %v803_v52  ;;  %v2091_v49 = vrot.slane %v992_v40, 11  ;;  %v313_v40 = vld [vmem:[#allocation3 + $0xc] sm:$0x8] }
  0x53   : > { %v931_v42 = vsel %vm2467_vm13, %v926_v14, %v930_v15  ;;  %v810_v23 = vpack.c.b16 %v806_v10, %v2471_v58  ;;  %v298_v58 = vsel %vm2381_vm10, 0, %v297_v50 }
  0x54   : > { %v934_v19 = vunpack.c.l.b16 %v931_v42  ;;  %299 = vst [vmem:[#allocation2 + $0x74] sm:$0x1] %v298_v58 }
  0x56   : > { %v938_v26 = vpack.c.b16 %v934_v19, %v734_v18 }
  0x59   : > { %2078 = vmatmul.msk.bf16.gmra.mxu3 %vm548_vm7, %v808_v61 }
  0x5b   : > { %2088 = vmatmul.msk.bf16.gmra.mxu1 %vm548_vm7, %v936_v44  ;;  %v418_v35 = vld [vmem:[#allocation2 + $0x74] sm:$0xf] }
  0x5c   : > { %v1104_v44 = vshll.u32 %v418_v35, 16  ;;  %v310_v35 = vld [vmem:[#allocation3] sm:$0x8] }
  0x5d   : > { %v311_v6 = vsel %vm2688_vm1, 0, %v310_v35 }
  0x5e   : > { %2073 = vmatmul.msk.bf16.gmra.mxu2 %vm548_vm7, %v737_v11  ;;  %312 = vst [vmem:[#allocation3] sm:$0x8] %v311_v6  ;;  %v2135_v6 = vld [vmem:[%s3156_s2 + $0x10] sm:$0xf] }
  0x5f   : > { %2084 = vmatmul.msk.bf16.gmra.mxu0 %vm548_vm7, %v869_v8 }
  0x69   : > { %2079 = vmatmul.msk.bf16.gmra.mxu3 %vm548_vm7, %v809_v39 }
  0x6b   : > { %2089 = vmatmul.msk.bf16.gmra.mxu1 %vm548_vm7, %v937_v32 }
  0x6e   : > { %2074 = vmatmul.msk.bf16.gmra.mxu2 %vm548_vm7, %v738_v4 }
  0x6f   : > { %2085 = vmatmul.msk.bf16.gmra.mxu0 %vm548_vm7, %v870_v36 }
  0x79   : > { %2080 = vmatmul.msk.bf16.gmra.mxu3 %vm548_vm7, %v810_v23 }
  0x7b   : > { %2090 = vmatmul.msk.bf16.gmra.mxu1 %vm548_vm7, %v938_v26 }
  0x7e   : > { %2093 = vmatmul.msk.bf16.vlgmr.msra.gmra.mxu2 %vm548_vm7, %v2490_v46  ;;  %v417_v46 = vld [vmem:[#allocation2 + $0x70] sm:$0xf] }
  0x7f   : > { %2103 = vmatmul.msk.bf16.vlgmr.msra.gmra.mxu0 %vm548_vm7, %v2522_v21  ;;  %v997_v21 = vshrl.u32 %v417_v46, 16  ;;  %v1000_v51 = vshll.u32 %v417_v46, 16  ;;  %v1054_v22 = vunpack.c.l.b16 %v417_v46 }
  0x81   : > { %v1099_v61 = vrot.slane %v997_v21, 4  ;;  %v1100_v7 = vrot.slane %v1000_v51, 5  ;;  %v1055_v16 = vpack.c.b16 %v1054_v22, %v866_v43  ;;  %v316_v22 = vld [vmem:[#allocation3 + $0x18] sm:$0x8] }
  0x83   : > { %v1101_v47 = vor.u32 %v1100_v7, %v1099_v61 }
  0x85   : > { %v1102_v57 = vrot.slane %v1101_v47, 4  ;;  %v342_v47 = vld [vmem:[#allocation3 + $0x8] sm:$0x1] }
  0x89   : > { %2098 = vmatmul.msk.bf16.vlgmr.msra.gmra.mxu3 %vm548_vm7, %v2418_v62  ;;  %v999_v62 = vrot.slane %v997_v21, 7 }
  0x8b   : > { %v1002_v55 = vor.u32 %v1000_v51, %v999_v62  ;;  %v314_v62 = vsel %vm2688_vm1, 0, %v313_v40  ;;  %v2130_v40 = vld [vmem:[%s3156_s2 + $0xc] sm:$0xf] }
  0x8c   : > { %315 = vst [vmem:[#allocation3 + $0xc] sm:$0x8] %v314_v62 }
  0x8e   : > { %2094 = vmatmul.msk.bf16.gmra.mxu2 %vm548_vm7, %v2368_v20 }
  0x8f   : > { %2104 = vmatmul.msk.bf16.gmra.mxu0 %vm548_vm7, %v737_v11  ;;  %v1106_v11 = vrot.slane %v1104_v44, 5 }
  0x91   : > { %v1107_v25 = vsel %vm2467_vm13, %v1102_v57, %v1106_v11  ;;  %v343_v57 = vsel %vm2701_vm3, 0, %v342_v47  ;;  %v1622_v47 = vsel %vm1362_vm14, %v2130_v40, 0 }
  0x92   : > { %v1110_v59 = vunpack.c.l.b16 %v1107_v25  ;;  %344 = vst [vmem:[#allocation3 + $0x8] sm:$0x1] %v343_v57  ;;  %1631 = vmatpush.bf16.msrb.mxu0 %v1622_v47 }
  0x94   : > { %v1111_v28 = vpack.c.b16 %v1110_v59, %v934_v19  ;;  %v2124_v59 = vld [vmem:[%s3156_s2 + $0x8] sm:$0xf] }
  0x99   : > { %2099 = vmatmul.msk.bf16.gmra.mxu3 %vm548_vm7, %v2316_v41  ;;  %v1003_v41 = vsel %vm2331_vm8, %v2091_v49, %v1002_v55  ;;  %v345_v49 = vld [vmem:[#allocation3 + $0x14] sm:$0x1] }
  0x9a   : > { %v1006_v27 = vunpack.c.l.b16 %v1003_v41  ;;  %v346_v11 = vsel %vm2701_vm3, 0, %v345_v49  ;;  %v1682_v49 = vsel %vm1362_vm14, %v2135_v6, 0  ;;  %v354_v6 = vld [vmem:[#allocation3 + $0x38] sm:$0x1] }
  0x9b   : > { %347 = vst [vmem:[#allocation3 + $0x14] sm:$0x1] %v346_v11  ;;  %1691 = vmatpush.bf16.msrb.mxu1 %v1682_v49  ;;  %v351_v11 = vld [vmem:[#allocation3 + $0x2c] sm:$0x1] }
  0x9c   : > { %v2597_v38 = vpop.f32.mrf.mxu0  ;;  %v1007_v54 = vpack.c.b16 %v1006_v27, %v806_v10  ;;  %v1326_v27 = vld [vmem:[%s3156_s2] sm:$0xf] }
  0x9e   : > { %2095 = vmatmul.msk.bf16.gmra.mxu2 %vm548_vm7, %v2479_v17 }
  0x9f   : > { %2105 = vmatmul.msk.bf16.gmra.mxu0 %vm548_vm7, %v738_v4 }
  0xa1   : > { %v584_v20 = vpop.f32.mrf.mxu2 }
  0xa4   : > { %v2602_v8 = vpop.f32.mrf.mxu0 }
  0xa7   : > { %v630_v37 = vpop.f32.mrf.mxu1 }
  0xa8   : > { %v631_v41 = vadd.f32 %v630_v37, %v2597_v38  ;;  %v317_v38 = vsel %vm2688_vm1, 0, %v316_v22 }
  0xa9   : > { %v2608_v56 = vpop.f32.mrf.mxu2  ;;  %2100 = vmatmul.msk.bf16.gmra.mxu3 %vm548_vm7, %v2399_v48  ;;  %318 = vst [vmem:[#allocation3 + $0x18] sm:$0x8] %v317_v38 }
  0xab   : > { %v640_v17 = vpop.f32.mrf.mxu3 }
  0xac   : > { %v2610_v31 = vadd.f32 %v640_v17, %v584_v20  ;;  %v2614_v34 = vpop.f32.mrf.mxu0 }
  0xae   : > { %2096 = vmatmul.msk.bf16.gmra.mxu2 %vm548_vm7, %v1007_v54 }
  0xaf   : > { %2106 = vmatmul.msk.bf16.gmra.mxu0 %vm548_vm7, %v1111_v28  ;;  %v632_v14 = vpop.f32.mrf.mxu1  ;;  %v1420_v28 = vsel %vm1362_vm14, %v1326_v27, 0 }
  0xb0   : > { %1429 = vmatpush.bf16.msrb.mxu2 %v1420_v28  ;;  %v633_v0 = vadd.f32 %v632_v14, %v2602_v8  ;;  %v319_v8 = vld [vmem:[#allocation3 + $0x24] sm:$0x8]  ;;  %v2748_v28 = vld [vmem:[%s3157_s3] ss:$0 sm:$0xff] }
  0xb1   : > { %v589_v1 = vpop.f32.mrf.mxu2 }
  0xb3   : > { %v2618_v3 = vpop.f32.mrf.mxu3 }
  0xb4   : > { %v2620_v60 = vpop.f32.mrf.mxu0 }
  0xb8   : > { %v2655_v10 = vpop.f32.mrf.mxu1 }
  0xb9   : > { %v2624_v2 = vpop.f32.mrf.mxu2  ;;  %2101 = vmatmul.msk.bf16.gmra.mxu3 %vm548_vm7, %v1055_v16  ;;  %v636_v27 = vadd.f32 %v2655_v10, %v2614_v34 }
  0xbc   : > { %v2627_v48 = vpop.f32.mrf.mxu0  ;;  %v645_v39 = vpop.f32.mrf.mxu3 }
  0xbd   : > { %v2629_v18 = vadd.f32 %v645_v39, %v589_v1  ;;  %v1550_v1 = vsel %vm1362_vm14, %v2124_v59, 0  ;;  %v348_v39 = vld [vmem:[#allocation3 + $0x20] sm:$0x1] }
  0xbe   : > { %1559 = vmatpush.bf16.msrb.mxu3 %v1550_v1  ;;  %v349_v29 = vsel %vm2701_vm3, 0, %v348_v39 }
  0xbf   : > { %350 = vst [vmem:[#allocation3 + $0x20] sm:$0x1] %v349_v29  ;;  %v322_v29 = vld [vmem:[#allocation3 + $0x30] sm:$0x8] }
  0xc0   : > { %v2665_v45 = vpop.f32.mrf.mxu1 }
  0xc1   : > { %v763_v9 = vpop.f32.mrf.mxu2  ;;  %v638_v34 = vadd.f32 %v2665_v45, %v2620_v60 }
  0xc2   : > { %v783_v25 = vadd.f32 %v763_v9, %v631_v41 }
  0xc4   : > { %v2634_v12 = vpop.f32.mrf.mxu0  ;;  %v2637_v43 = vpop.f32.mrf.mxu3 }
  0xc8   : > { %v963_v21 = vpop.f32.mrf.mxu1 }
  0xc9   : > { %v2639_v32 = vpop.f32.mrf.mxu2 }
  0xcc   : > { %v2641_v33 = vpop.f32.mrf.mxu0  ;;  %v835_v4 = vpop.f32.mrf.mxu3 }
  0xcd   : > { %v855_v16 = vadd.f32 %v835_v4, %v783_v25  ;;  %v784_v4 = vadd.f32 %v2639_v32, %v633_v0  ;;  %v320_v32 = vsel %vm2688_vm1, 0, %v319_v8  ;;  %v352_v25 = vsel %vm2701_vm3, 0, %v351_v11 }
  0xce   : > { %321 = vst [vmem:[#allocation3 + $0x24] sm:$0x8] %v320_v32  ;;  %v323_v0 = vsel %vm2688_vm1, 0, %v322_v29 }
  0xcf   : > { %v915_v37 = vadd.f32 %v2627_v48, %v855_v16  ;;  %353 = vst [vmem:[#allocation3 + $0x2c] sm:$0x1] %v352_v25 }
  0xd0   : > { %v965_v44 = vpop.f32.mrf.mxu1  ;;  %324 = vst [vmem:[#allocation3 + $0x30] sm:$0x8] %v323_v0 }
  0xd1   : > { %v2643_v36 = vpop.f32.mrf.mxu2  ;;  %v983_v14 = vadd.f32 %v963_v21, %v915_v37 }
  0xd2   : > { %v785_v1 = vadd.f32 %v2643_v36, %v636_v27 }
  0xd4   : > { %v2645_v13 = vpop.f32.mrf.mxu0  ;;  %v2647_v63 = vpop.f32.mrf.mxu3 }
  0xd5   : > { %v856_v48 = vadd.f32 %v2647_v63, %v784_v4 }
  0xd7   : > { %v916_v21 = vadd.f32 %v2634_v12, %v856_v48  ;;  %v2755_v12 = vld [vmem:[#allocation3 + $0x4] sm:$0xf] }
  0xd8   : > { %v968_v35 = vpop.f32.mrf.mxu1  ;;  %v1228_v60 = vshrl.u32 %v2755_v12, 16  ;;  %v1231_v45 = vshll.u32 %v2755_v12, 16 }
  0xd9   : > { %v2649_v15 = vpop.f32.mrf.mxu2  ;;  %v984_v10 = vadd.f32 %v965_v44, %v916_v21  ;;  %v1192_v44 = vld [vmem:[#allocation3] sm:$0xf]  ;;  %v1194_v21 = vld [vmem:[#allocation3 + $0x8] sm:$0xf] }
  0xda   : > { %v786_v37 = vadd.f32 %v2649_v15, %v638_v34  ;;  %v355_v15 = vsel %vm2701_vm3, 0, %v354_v6  ;;  %v1230_v32 = vrot.slane %v1228_v60, 7  ;;  %v1451_v11 = vrot.slane %v1228_v60, 4 }
  0xdb   : > { %356 = vst [vmem:[#allocation3 + $0x38] sm:$0x1] %v355_v15 }
  0xdc   : > { %v2651_v52 = vpop.f32.mrf.mxu0  ;;  %v2653_v42 = vpop.f32.mrf.mxu3  ;;  %v1233_v0 = vor.u32 %v1231_v45, %v1230_v32 }
  0xdd   : > { %v857_v16 = vadd.f32 %v2653_v42, %v785_v1  ;;  %v643_v1 = vadd.f32 %v2618_v3, %v2608_v56  ;;  %v1456_v56 = vshll.u32 %v1194_v21, 16 }
  0xdf   : > { %v917_v42 = vadd.f32 %v2641_v33, %v857_v16  ;;  %v1195_v33 = vld [vmem:[#allocation3 + $0xc] sm:$0xf] }
  0xe0   : > { %v970_v22 = vpop.f32.mrf.mxu1 }
  0xe1   : > { %v2657_v19 = vpop.f32.mrf.mxu2  ;;  %v985_v25 = vadd.f32 %v968_v35, %v917_v42  ;;  %v1197_v42 = vld [vmem:[#allocation3 + $0x14] sm:$0xf] }
  0xe4   : > { %v2659_v23 = vpop.f32.mrf.mxu0  ;;  %v2661_v26 = vpop.f32.mrf.mxu3 }
  0xe5   : > { %v858_v47 = vadd.f32 %v2661_v26, %v786_v37 }
  0xe7   : > { %v918_v27 = vadd.f32 %v2645_v13, %v858_v47  ;;  %v787_v13 = vadd.f32 %v2657_v19, %v2610_v31  ;;  %v1458_v47 = vrot.slane %v1456_v56, 5 }
  0xe9   : > { %v2663_v30 = vpop.f32.mrf.mxu2 }
  0xea   : > { %v788_v19 = vadd.f32 %v2663_v30, %v643_v1  ;;  %v1465_v30 = vshll.u32 %v1197_v42, 16 }
  0xec   : > { %v2671_v50 = vpop.f32.mrf.mxu3  ;;  %v2673_v58 = vpop.f32.mrf.mxu0 }
  0xed   : > { %v859_v31 = vadd.f32 %v2671_v50, %v787_v13  ;;  %v1467_v13 = vrot.slane %v1465_v30, 5 }
  0xf1   : > { %v2683_v46 = vpop.f32.mrf.mxu2 }
  0xf4   : > { %v2685_v51 = vpop.f32.mrf.mxu3  ;;  %v2692_v7 = vpop.f32.mrf.mxu0 }
  0xf9   : > { %v2694_v5 = vpop.f32.mrf.mxu2 }
  0xfc   : > { %v2705_v55 = vpop.f32.mrf.mxu3  ;;  %v1127_v54 = vpop.f32.mrf.mxu0 }
 0x101   : > { %v1023_v17 = vpop.f32.mrf.mxu2 }
 0x102   : > { %v1043_v41 = vadd.f32 %v1023_v17, %v983_v14  ;;  %v1223_v14 = vshrl.u32 %v1192_v44, 16 }
 0x104   : > { %v2722_v9 = vpop.f32.mrf.mxu3  ;;  %v1129_v57 = vpop.f32.mrf.mxu0 }
 0x109   : > { %v1025_v62 = vpop.f32.mrf.mxu2 }
 0x10a   : > { %v1044_v4 = vadd.f32 %v1025_v62, %v984_v10  ;;  %v2107_v10 = vrot.slane %v1223_v14, 11  ;;  %v860_v14 = vadd.f32 %v2685_v51, %v788_v19  ;;  %v1200_v19 = vld [vmem:[#allocation3 + $0x20] sm:$0xf] }
 0x10c   : > { %v1071_v59 = vpop.f32.mrf.mxu3  ;;  %v1132_v40 = vpop.f32.mrf.mxu0  ;;  %v1234_v6 = vsel %vm2331_vm8, %v2107_v10, %v1233_v0  ;;  %v920_v0 = vadd.f32 %v2659_v23, %v860_v14 }
 0x10d   : > { %v1091_v63 = vadd.f32 %v1071_v59, %v1043_v41  ;;  %v1452_v41 = vrot.slane %v1231_v45, 5  ;;  %v2768_v59 = vpop.f32.mrf.mxu1  ;;  %v1395_v1 = vunpack.c.l.b16 %v1234_v6  ;;  %v331_v6 = vld [vmem:[#allocation3 + $0x54] sm:$0x8] }
 0x10e   : > { %v332_v30 = vsel %vm2688_vm1, 0, %v331_v6 }
 0x10f   : > { %v1147_v17 = vadd.f32 %v1127_v54, %v1091_v63  ;;  %v325_v63 = vld [vmem:[#allocation3 + $0x3c] sm:$0x8]  ;;  %v1453_v37 = vor.u32 %v1452_v41, %v1451_v11  ;;  %v1198_v41 = vld [vmem:[#allocation3 + $0x18] sm:$0xf]  ;;  %333 = vst [vmem:[#allocation3 + $0x54] sm:$0x8] %v332_v30 }
 0x110   : > { %v326_v16 = vsel %vm2688_vm1, 0, %v325_v63 }
 0x111   : > { %v1028_v38 = vpop.f32.mrf.mxu2  ;;  %v1159_v39 = vadd.f32 %v2748_v28, %v1147_v17  ;;  %v1236_v17 = vshrl.u32 %v1195_v33, 16  ;;  %327 = vst [vmem:[#allocation3 + $0x3c] sm:$0x8] %v326_v16  ;;  %v1454_v50 = vrot.slane %v1453_v37, 4  ;;  %v919_v33 = vadd.f32 %v2651_v52, %v859_v31 }
 0x112   : > { %v1045_v34 = vadd.f32 %v1028_v38, %v985_v25 }
 0x113   : > { %v1167_v36 = vmax.f32 %v1159_v39, 0.0  ;;  %v357_v39 = vld [vmem:[#allocation3 + $0x44] sm:$0x1]  ;;  %v2108_v60 = vrot.slane %v1236_v17, 11  ;;  %v360_v17 = vld [vmem:[#allocation3 + $0x50] sm:$0x1]  ;;  %v1459_v52 = vsel %vm2467_vm13, %v1454_v50, %v1458_v47  ;;  %v987_v42 = vadd.f32 %v2768_v59, %v919_v33 }
 0x114   : > { %v1073_v54 = vpop.f32.mrf.mxu3  ;;  %v358_v3 = vsel %vm2701_vm3, 0, %v357_v39  ;;  %v1134_v38 = vpop.f32.mrf.mxu0  ;;  %v1249_v39 = vshrl.u32 %v1198_v41, 16  ;;  %v1203_v59 = vld [vmem:[#allocation3 + $0x2c] sm:$0xf] }
 0x115   : > { %v1175_v49 = vpack.c.bf16 %v1167_v36, %v1167_v36  ;;  %v1092_v8 = vadd.f32 %v1073_v54, %v1044_v4  ;;  %v1337_v4 = vunpack.c.l.b16 %v2755_v12  ;;  %359 = vst [vmem:[#allocation3 + $0x44] sm:$0x1] %v358_v3 }
 0x117   : > { %1184 = vst.msk [vmem:[#allocation3 + $0x10] sm:$0xf] %vm300_vm15, %v1175_v49  ;;  %v1148_v62 = vadd.f32 %v1129_v57, %v1092_v8  ;;  %v2775_v57 = vadd.f32 %v2637_v43, %v2624_v2  ;;  %v986_v2 = vadd.f32 %v970_v22, %v918_v27  ;;  %v975_v27 = vpop.f32.mrf.mxu1 }
 0x118   : > { %v988_v50 = vadd.f32 %v975_v27, %v920_v0 }
 0x119   : > { %v1030_v48 = vpop.f32.mrf.mxu2  ;;  %v1160_v26 = vadd.f32 %v2748_v28, %v1148_v62  ;;  %v790_v33 = vadd.f32 %v2694_v5, %v2775_v57 }
 0x11a   : > { %v1046_v21 = vadd.f32 %v1030_v48, %v986_v2 }
 0x11b   : > { %v1168_v35 = vmax.f32 %v1160_v26, 0.0 }
 0x11c   : > { %v1076_v29 = vpop.f32.mrf.mxu3 }
 0x11d   : > { %v1176_v43 = vpack.c.bf16 %v1168_v35, %v1168_v35  ;;  %v1093_v36 = vadd.f32 %v1076_v29, %v1045_v34  ;;  %v361_v35 = vsel %vm2701_vm3, 0, %v360_v17  ;;  %v789_v29 = vadd.f32 %v2683_v46, %v2629_v18  ;;  %v1137_v18 = vpop.f32.mrf.mxu0 }
 0x11e   : > { %v2786_v54 = vld [vmem:[#allocation3 + $0x10] sm:$0xf]  ;;  %362 = vst [vmem:[#allocation3 + $0x50] sm:$0x1] %v361_v35 }
 0x11f   : > { %1185 = vst.msk [vmem:[#allocation3 + $0x1c] sm:$0xf] %vm300_vm15, %v1176_v43  ;;  %v1149_v45 = vadd.f32 %v1132_v40, %v1093_v36  ;;  %v1241_v22 = vshrl.u32 %v2786_v54, 16  ;;  %v1244_v44 = vshll.u32 %v2786_v54, 16  ;;  %v1338_v12 = vunpack.c.l.b16 %v2786_v54  ;;  %v328_v40 = vld [vmem:[#allocation3 + $0x48] sm:$0x8] }
 0x120   : > { %v329_v25 = vsel %vm2688_vm1, 0, %v328_v40  ;;  %v1525_v43 = vunpack.c.l.b16 %v1459_v52  ;;  %v861_v31 = vadd.f32 %v2705_v55, %v789_v29  ;;  %v363_v40 = vld [vmem:[#allocation3 + $0x5c] sm:$0x1] }
 0x121   : > { %v1161_v49 = vadd.f32 %v2748_v28, %v1149_v45  ;;  %v1243_v8 = vrot.slane %v1241_v22, 7  ;;  %v1345_v15 = vpack.c.b16 %v1338_v12, %v1337_v4  ;;  %v1460_v62 = vrot.slane %v1241_v22, 4  ;;  %v1033_v11 = vpop.f32.mrf.mxu2  ;;  %330 = vst [vmem:[#allocation3 + $0x48] sm:$0x8] %v329_v25 }
 0x122   : > { %v1461_v32 = vrot.slane %v1244_v44, 5  ;;  %v921_v14 = vadd.f32 %v2673_v58, %v861_v31  ;;  %v364_v27 = vsel %vm2701_vm3, 0, %v363_v40 }
 0x123   : > { %v1169_v26 = vmax.f32 %v1161_v49, 0.0  ;;  %2116 = vmatmul.msk.bf16.vlgmr.msra.gmra.mxu1 %vm1349_vm4, %v1345_v15  ;;  %v1246_v63 = vor.u32 %v1244_v44, %v1243_v8  ;;  %v1201_v44 = vld [vmem:[#allocation3 + $0x24] sm:$0xf]  ;;  %v1047_v8 = vadd.f32 %v1033_v11, %v987_v42  ;;  %365 = vst [vmem:[#allocation3 + $0x5c] sm:$0x1] %v364_v27 }
 0x124   : > { %v1078_v16 = vpop.f32.mrf.mxu3  ;;  %v1462_v51 = vor.u32 %v1461_v32, %v1460_v62  ;;  %v1262_v25 = vshrl.u32 %v1201_v44, 16 }
 0x125   : > { %v1177_v34 = vpack.c.bf16 %v1169_v26, %v1169_v26  ;;  %v1094_v10 = vadd.f32 %v1078_v16, %v1046_v21  ;;  %v1247_v48 = vsel %vm2331_vm8, %v2108_v60, %v1246_v63  ;;  %v978_v26 = vpop.f32.mrf.mxu1  ;;  %v1483_v16 = vshll.u32 %v1203_v59, 16 }
 0x126   : > { %v2811_v37 = vunpack.c.l.b16 %v1247_v48  ;;  %v1463_v56 = vrot.slane %v1462_v51, 4  ;;  %v2813_v3 = vld [vmem:[#allocation3 + $0x1c] sm:$0xf] }
 0x127   : > { %1186 = vst.msk [vmem:[#allocation3 + $0x28] sm:$0xf] %vm300_vm15, %v1177_v34  ;;  %v1150_v2 = vadd.f32 %v1134_v38, %v1094_v10  ;;  %v1254_v36 = vshrl.u32 %v2813_v3, 16  ;;  %v1257_v4 = vshll.u32 %v2813_v3, 16  ;;  %v2109_v38 = vrot.slane %v1249_v39, 11 }
 0x128   : > { %v1403_v23 = vpack.c.b16 %v2811_v37, %v1395_v1  ;;  %v1468_v46 = vsel %vm2467_vm13, %v1463_v56, %v1467_v13  ;;  %v1474_v1 = vshll.u32 %v1200_v19, 16  ;;  %v1339_v58 = vunpack.c.l.b16 %v2813_v3 }
 0x129   : > { %v1162_v60 = vadd.f32 %v2748_v28, %v1150_v2  ;;  %v2824_v45 = vunpack.c.l.b16 %v1468_v46  ;;  %v1256_v22 = vrot.slane %v1254_v36, 7  ;;  %v1469_v55 = vrot.slane %v1254_v36, 4  ;;  %v1035_v41 = vpop.f32.mrf.mxu2  ;;  %v334_v36 = vld [vmem:[#allocation3 + $0x60] sm:$0x8] }
 0x12a   : > { %2120 = vmatmul.msk.bf16.vlgmr.msrb.gmra.mxu2 %vm1349_vm4, %v1403_v23  ;;  %v1470_v47 = vrot.slane %v1257_v4, 5  ;;  %v2845_v34 = vadd.f32 %v978_v26, %v921_v14  ;;  %v862_v10 = vadd.f32 %v2722_v9, %v790_v33  ;;  %v2110_v39 = vrot.slane %v1262_v25, 11 }
 0x12b   : > { %v1170_v49 = vmax.f32 %v1162_v60, 0.0  ;;  %v1533_v15 = vpack.c.b16 %v2824_v45, %v1525_v43  ;;  %v1259_v62 = vor.u32 %v1257_v4, %v1256_v22  ;;  %v1204_v43 = vld [vmem:[#allocation3 + $0x30] sm:$0xf]  ;;  %v1139_v4 = vpop.f32.mrf.mxu0  ;;  %v1476_v31 = vrot.slane %v1474_v1, 5  ;;  %v2140_v60 = vld [vmem:[%s3156_s2 + $0x14] sm:$0xf] }
 0x12c   : > { %v1081_v32 = vpop.f32.mrf.mxu3  ;;  %v1471_v57 = vor.u32 %v1470_v47, %v1469_v55  ;;  %v1048_v23 = vadd.f32 %v1035_v41, %v988_v50  ;;  %v1485_v19 = vrot.slane %v1483_v16, 5  ;;  %v1275_v6 = vshrl.u32 %v1204_v43, 16 }
 0x12d   : > { %v1178_v21 = vpack.c.bf16 %v1170_v49, %v1170_v49  ;;  %v1095_v63 = vadd.f32 %v1081_v32, %v1047_v8  ;;  %2125 = vmatmul.msk.bf16.vlgmr.msrb.gmra.mxu3 %vm1349_vm4, %v1533_v15  ;;  %v1260_v11 = vsel %vm2331_vm8, %v2109_v38, %v1259_v62  ;;  %v2146_v38 = vld [vmem:[%s3156_s2 + $0x18] sm:$0xf]  ;;  %v1750_v59 = vsel %vm1362_vm14, %v2140_v60, 0  ;;  %v366_v49 = vld [vmem:[#allocation3 + $0x68] sm:$0x1] }
 0x12e   : > { %v1397_v17 = vunpack.c.l.b16 %v1260_v11  ;;  %v2838_v5 = vld [vmem:[#allocation3 + $0x28] sm:$0xf]  ;;  %v1472_v9 = vrot.slane %v1471_v57, 4  ;;  %v1810_v50 = vsel %vm1362_vm14, %v2146_v38, 0  ;;  %1759 = vmatpush.bf16.msra.mxu2 %v1750_v59  ;;  %v337_v8 = vld [vmem:[#allocation3 + $0x6c] sm:$0x8]  ;;  %v922_v41 = vadd.f32 %v2692_v7, %v862_v10  ;;  %v980_v7 = vpop.f32.mrf.mxu1 }
 0x12f   : > { %1187 = vst.msk [vmem:[#allocation3 + $0x34] sm:$0xf] %vm300_vm15, %v1178_v21  ;;  %v1151_v52 = vadd.f32 %v1137_v18, %v1095_v63  ;;  %v1267_v51 = vshrl.u32 %v2838_v5, 16  ;;  %v1270_v13 = vshll.u32 %v2838_v5, 16  ;;  %v1340_v35 = vunpack.c.l.b16 %v2838_v5  ;;  %1819 = vmatpush.bf16.msra.mxu3 %v1810_v50  ;;  %v1206_v21 = vld [vmem:[#allocation3 + $0x38] sm:$0xf] }
 0x130   : > { %v1605_v48 = vpack.c.b16 %v1397_v17, %v2811_v37  ;;  %v335_v37 = vsel %vm2688_vm1, 0, %v334_v36  ;;  %v1477_v40 = vsel %vm2467_vm13, %v1472_v9, %v1476_v31  ;;  %v367_v32 = vsel %vm2701_vm3, 0, %v366_v49  ;;  %v1207_v10 = vld [vmem:[#allocation3 + $0x3c] sm:$0xf] }
 0x131   : > { %v1163_v29 = vadd.f32 %v2748_v28, %v1151_v52  ;;  %v1269_v0 = vrot.slane %v1267_v51, 7  ;;  %v2854_v56 = vpack.c.b16 %v1340_v35, %v1339_v58  ;;  %v1478_v2 = vrot.slane %v1267_v51, 4  ;;  %336 = vst [vmem:[#allocation3 + $0x60] sm:$0x8] %v335_v37  ;;  %v1038_v15 = vpop.f32.mrf.mxu2 }
 0x132   : > { %2131 = vmatmul.msk.bf16.vlgmr.msrb.gmra.mxu0 %vm1349_vm4, %v1605_v48  ;;  %v1479_v42 = vrot.slane %v1270_v13, 5  ;;  %v2111_v1 = vrot.slane %v1275_v6, 11  ;;  %368 = vst [vmem:[#allocation3 + $0x68] sm:$0x1] %v367_v32  ;;  %v338_v57 = vsel %vm2688_vm1, 0, %v337_v8  ;;  %v2891_v52 = vunpack.c.l.b16 %v1477_v40 }
 0x133   : > { %v1171_v18 = vmax.f32 %v1163_v29, 0.0  ;;  %2117 = vmatmul.msk.bf16.gmra.mxu1 %vm1349_vm4, %v2854_v56  ;;  %v1272_v46 = vor.u32 %v1270_v13, %v1269_v0  ;;  %339 = vst [vmem:[#allocation3 + $0x6c] sm:$0x8] %v338_v57  ;;  %v369_v29 = vld [vmem:[#allocation3 + $0x74] sm:$0x1]  ;;  %v1049_v61 = vadd.f32 %v1038_v15, %v2845_v34  ;;  %v990_v36 = vadd.f32 %v980_v7, %v922_v41 }
 0x134   : > { %v1083_v22 = vpop.f32.mrf.mxu3  ;;  %v1480_v44 = vor.u32 %v1479_v42, %v1478_v2  ;;  %v1288_v9 = vshrl.u32 %v1207_v10, 16  ;;  %v2151_v34 = vld [vmem:[%s3156_s2 + $0x1c] sm:$0xf] }
 0x135   : > { %v1179_v55 = vpack.c.bf16 %v1171_v18, %v1171_v18  ;;  %v1096_v47 = vadd.f32 %v1083_v22, %v1048_v23  ;;  %v1273_v30 = vsel %vm2331_vm8, %v2110_v39, %v1272_v46  ;;  %v1492_v39 = vshll.u32 %v1206_v21, 16  ;;  %v1209_v46 = vld [vmem:[#allocation3 + $0x44] sm:$0xf] }
 0x136   : > { %v2871_v62 = vunpack.c.l.b16 %v1273_v30  ;;  %v1481_v33 = vrot.slane %v1480_v44, 4  ;;  %v2875_v14 = vld [vmem:[#allocation3 + $0x34] sm:$0xf]  ;;  %v1858_v6 = vsel %vm1362_vm14, %v2151_v34, 0  ;;  %v2112_v49 = vrot.slane %v1288_v9, 11 }
 0x137   : > { %1188 = vst.msk [vmem:[#allocation3 + $0x40] sm:$0xf] %vm300_vm15, %v1179_v55  ;;  %v1152_v25 = vadd.f32 %v1139_v4, %v1096_v47  ;;  %v1280_v27 = vshrl.u32 %v2875_v14, 16  ;;  %v1283_v26 = vshll.u32 %v2875_v14, 16  ;;  %v1142_v4 = vpop.f32.mrf.mxu0  ;;  %v1341_v22 = vunpack.c.l.b16 %v2875_v14  ;;  %1867 = vmatpush.bf16.msra.mxu0 %v1858_v6 }
 0x138   : > { %v2884_v63 = vpack.c.b16 %v2871_v62, %v1397_v17  ;;  %v1486_v11 = vsel %vm2467_vm13, %v1481_v33, %v1485_v19  ;;  %v370_v19 = vsel %vm2701_vm3, 0, %v369_v29  ;;  %v1494_v44 = vrot.slane %v1492_v39, 5 }
 0x139   : > { %v1164_v16 = vadd.f32 %v2748_v28, %v1152_v25  ;;  %v2893_v51 = vunpack.c.l.b16 %v1486_v11  ;;  %v1282_v13 = vrot.slane %v1280_v27, 7  ;;  %v1488_v17 = vrot.slane %v1283_v26, 5  ;;  %v1040_v20 = vpop.f32.mrf.mxu2  ;;  %371 = vst [vmem:[#allocation3 + $0x74] sm:$0x1] %v370_v19  ;;  %v1210_v25 = vld [vmem:[#allocation3 + $0x48] sm:$0xf] }
 0x13a   : > { %2121 = vmatmul.msk.bf16.gmra.mxu2 %vm1349_vm4, %v2884_v63  ;;  %v1487_v48 = vrot.slane %v1280_v27, 4  ;;  %v1501_v15 = vshll.u32 %v1209_v46, 16  ;;  %v2156_v11 = vld [vmem:[%s3156_s2 + $0x20] sm:$0xf]  ;;  %v1213_v19 = vld [vmem:[#allocation3 + $0x54] sm:$0xf]  ;;  %v1666_v54 = vpack.c.b16 %v1341_v22, %v1340_v35 }
 0x13b   : > { %v1172_v0 = vmax.f32 %v1164_v16, 0.0  ;;  %v2900_v2 = vpack.c.b16 %v2893_v51, %v2891_v52  ;;  %v1285_v43 = vor.u32 %v1283_v26, %v1282_v13  ;;  %v1301_v16 = vshrl.u32 %v1210_v25, 16  ;;  %v1218_v35 = vld [vmem:[#allocation3 + $0x68] sm:$0xf] }
 0x13c   : > { %v1086_v42 = vpop.f32.mrf.mxu3  ;;  %v1489_v31 = vor.u32 %v1488_v17, %v1487_v48  ;;  %v1503_v7 = vrot.slane %v1501_v15, 5  ;;  %v1914_v13 = vsel %vm1362_vm14, %v2156_v11, 0 }
 0x13d   : > { %v1180_v37 = vpack.c.bf16 %v1172_v0, %v1172_v0  ;;  %v1097_v18 = vadd.f32 %v1086_v42, %v1049_v61  ;;  %2126 = vmatmul.msk.bf16.gmra.mxu3 %vm1349_vm4, %v2900_v2  ;;  %v1286_v23 = vsel %vm2331_vm8, %v2111_v1, %v1285_v43  ;;  %1923 = vmatpush.bf16.msra.mxu1 %v1914_v13 }
 0x13e   : > { %v1399_v60 = vunpack.c.l.b16 %v1286_v23  ;;  %v2911_v38 = vld [vmem:[#allocation3 + $0x40] sm:$0xf]  ;;  %v1490_v8 = vrot.slane %v1489_v31, 4 }
 0x13f   : > { %1189 = vst.msk [vmem:[#allocation3 + $0x4c] sm:$0xf] %vm300_vm15, %v1180_v37  ;;  %v1153_v59 = vadd.f32 %v1142_v4, %v1097_v18  ;;  %v1293_v50 = vshrl.u32 %v2911_v38, 16  ;;  %v1296_v55 = vshll.u32 %v2911_v38, 16  ;;  %v1342_v47 = vunpack.c.l.b16 %v2911_v38  ;;  %v1144_v29 = vpop.f32.mrf.mxu0 }
 0x140   : > { %v1606_v30 = vpack.c.b16 %v1399_v60, %v2871_v62  ;;  %v1050_v62 = vadd.f32 %v1040_v20, %v990_v36  ;;  %v1495_v39 = vsel %vm2467_vm13, %v1490_v8, %v1494_v44  ;;  %v2113_v18 = vrot.slane %v1301_v16, 11  ;;  %v1212_v44 = vld [vmem:[#allocation3 + $0x50] sm:$0xf]  ;;  %v1215_v20 = vld [vmem:[#allocation3 + $0x5c] sm:$0xf] }
 0x141   : > { %v1165_v40 = vadd.f32 %v2748_v28, %v1153_v59  ;;  %v1295_v33 = vrot.slane %v1293_v50, 7  ;;  %v2925_v32 = vpack.c.b16 %v1342_v47, %v1341_v22  ;;  %v1496_v41 = vrot.slane %v1293_v50, 4 }
 0x142   : > { %2132 = vmatmul.msk.bf16.gmra.mxu0 %vm1349_vm4, %v1606_v30  ;;  %v1497_v27 = vrot.slane %v1296_v55, 5  ;;  %v2947_v37 = vunpack.c.l.b16 %v1495_v39  ;;  %v1314_v30 = vshrl.u32 %v1213_v19, 16 }
 0x143   : > { %v1173_v26 = vmax.f32 %v1165_v40, 0.0  ;;  %v1298_v21 = vor.u32 %v1296_v55, %v1295_v33  ;;  %2118 = vmatmul.msk.bf16.gmra.mxu1 %vm1349_vm4, %v2925_v32 }
 0x144   : > { %v1498_v1 = vor.u32 %v1497_v27, %v1496_v41  ;;  %v1088_v57 = vpop.f32.mrf.mxu3  ;;  %v1519_v41 = vshll.u32 %v1215_v20, 16  ;;  %v2114_v11 = vrot.slane %v1314_v30, 11 }
 0x145   : > { %v1181_v10 = vpack.c.bf16 %v1173_v26, %v1173_v26  ;;  %v1098_v17 = vadd.f32 %v1088_v57, %v1050_v62  ;;  %v1299_v48 = vsel %vm2331_vm8, %v2112_v49, %v1298_v21 }
 0x146   : > { %v1400_v0 = vunpack.c.l.b16 %v1299_v48  ;;  %v1499_v61 = vrot.slane %v1498_v1, 4  ;;  %v2938_v43 = vld [vmem:[#allocation3 + $0x4c] sm:$0xf] }
 0x147   : > { %1190 = vst.msk [vmem:[#allocation3 + $0x58] sm:$0xf] %vm300_vm15, %v1181_v10  ;;  %v1154_v36 = vadd.f32 %v1144_v29, %v1098_v17  ;;  %v1306_v4 = vshrl.u32 %v2938_v43, 16  ;;  %v1309_v42 = vshll.u32 %v2938_v43, 16  ;;  %v1343_v26 = vunpack.c.l.b16 %v2938_v43  ;;  %v1216_v17 = vld [vmem:[#allocation3 + $0x60] sm:$0xf] }
 0x148   : > { %v2943_v9 = vpack.c.b16 %v1400_v0, %v1399_v60  ;;  %v1504_v31 = vsel %vm2467_vm13, %v1499_v61, %v1503_v7  ;;  %v1521_v29 = vrot.slane %v1519_v41, 5 }
 0x149   : > { %v1166_v23 = vadd.f32 %v2748_v28, %v1154_v36  ;;  %v2950_v46 = vunpack.c.l.b16 %v1504_v31  ;;  %v1308_v34 = vrot.slane %v1306_v4, 7  ;;  %v1505_v6 = vrot.slane %v1306_v4, 4 }
 0x14a   : > { %2122 = vmatmul.msk.bf16.gmra.mxu2 %vm1349_vm4, %v2943_v9  ;;  %v1506_v59 = vrot.slane %v1309_v42, 5  ;;  %v1510_v28 = vshll.u32 %v1212_v44, 16  ;;  %v1590_v36 = vshrl.u32 %v1216_v17, 16  ;;  %v1667_v3 = vpack.c.b16 %v1343_v26, %v1342_v47 }
 0x14b   : > { %v1174_v60 = vmax.f32 %v1166_v23, 0.0  ;;  %v2956_v50 = vpack.c.b16 %v2950_v46, %v2947_v37  ;;  %v1311_v55 = vor.u32 %v1309_v42, %v1308_v34 }
 0x14c   : > { %v1507_v49 = vor.u32 %v1506_v59, %v1505_v6  ;;  %v1512_v57 = vrot.slane %v1510_v28, 5  ;;  %v2129_v44 = vrot.slane %v1590_v36, 11  ;;  %v1665_v28 = vpack.c.b16 %v1339_v58, %v1338_v12  ;;  %v1220_v58 = vld [vmem:[#allocation3 + $0x70] sm:$0xf] }
 0x14d   : > { %v1182_v8 = vpack.c.bf16 %v1174_v60, %v1174_v60  ;;  %2127 = vmatmul.msk.bf16.gmra.mxu3 %vm1349_vm4, %v2956_v50  ;;  %v1312_v15 = vsel %vm2331_vm8, %v2113_v18, %v1311_v55  ;;  %v1734_v12 = vpack.c.b16 %v2947_v37, %v2893_v51  ;;  %v1795_v14 = vshrl.u32 %v1220_v58, 16  ;;  %v1219_v51 = vld [vmem:[#allocation3 + $0x6c] sm:$0xf] }
 0x14e   : > { %v1401_v40 = vunpack.c.l.b16 %v1312_v15  ;;  %v2962_v33 = vld [vmem:[#allocation3 + $0x58] sm:$0xf]  ;;  %v1508_v1 = vrot.slane %v1507_v49, 4  ;;  %v1790_v22 = vshrl.u32 %v1219_v51, 16  ;;  %v1798_v37 = vshll.u32 %v1220_v58, 16 }
 0x14f   : > { %1191 = vst.msk [vmem:[#allocation3 + $0x64] sm:$0xf] %vm300_vm15, %v1182_v8  ;;  %v1319_v25 = vshrl.u32 %v2962_v33, 16  ;;  %v1322_v27 = vshll.u32 %v2962_v33, 16  ;;  %v1344_v62 = vunpack.c.l.b16 %v2962_v33  ;;  %v1733_v8 = vpack.c.b16 %v2891_v52, %v2824_v45 }
 0x150   : > { %v1607_v21 = vpack.c.b16 %v1401_v40, %v1400_v0  ;;  %v1513_v61 = vsel %vm2467_vm13, %v1508_v1, %v1512_v57  ;;  %v1726_v52 = vshll.u32 %v1218_v35, 16  ;;  %v1797_v38 = vrot.slane %v1795_v14, 7 }
 0x151   : > { %v1321_v7 = vrot.slane %v1319_v25, 7  ;;  %v2971_v16 = vpack.c.b16 %v1344_v62, %v1343_v26  ;;  %v1514_v13 = vrot.slane %v1319_v25, 4  ;;  %v1515_v10 = vrot.slane %v1322_v27, 5 }
 0x152   : > { %2133 = vmatmul.msk.bf16.gmra.mxu0 %vm1349_vm4, %v1607_v21  ;;  %v1531_v34 = vunpack.c.l.b16 %v1513_v61  ;;  %v2145_v15 = vrot.slane %v1790_v22, 11  ;;  %v1852_v1 = vunpack.c.l.b16 %v1220_v58  ;;  %v1898_v17 = vrot.slane %v1798_v37, 5 }
 0x153   : > { %v1324_v48 = vor.u32 %v1322_v27, %v1321_v7  ;;  %2119 = vmatmul.msk.bf16.gmra.mxu1 %vm1349_vm4, %v2971_v16  ;;  %v1516_v39 = vor.u32 %v1515_v10, %v1514_v13  ;;  %v1897_v10 = vrot.slane %v1795_v14, 4 }
 0x155   : > { %v1325_v0 = vsel %vm2331_vm8, %v2114_v11, %v1324_v48  ;;  %v1517_v43 = vrot.slane %v1516_v39, 4  ;;  %v1221_v39 = vld [vmem:[#allocation3 + $0x74] sm:$0xf]  ;;  %v1899_v61 = vor.u32 %v1898_v17, %v1897_v10 }
 0x156   : > { %v1402_v4 = vunpack.c.l.b16 %v1325_v0  ;;  %v2980_v42 = vld [vmem:[#allocation3 + $0x64] sm:$0xf] }
 0x157   : > { %v1522_v31 = vsel %vm2467_vm13, %v1517_v43, %v1521_v29  ;;  %v1595_v18 = vshrl.u32 %v2980_v42, 16  ;;  %v1598_v59 = vshll.u32 %v2980_v42, 16  ;;  %v1664_v47 = vunpack.c.l.b16 %v2980_v42 }
 0x158   : > { %v1406_v23 = vpack.c.b16 %v1402_v4, %v1401_v40  ;;  %v1532_v19 = vunpack.c.l.b16 %v1522_v31  ;;  %v1800_v40 = vor.u32 %v1798_v37, %v1797_v38  ;;  %v1902_v43 = vshll.u32 %v1221_v39, 16 }
 0x159   : > { %v1597_v6 = vrot.slane %v1595_v18, 7  ;;  %v1721_v45 = vrot.slane %v1595_v18, 4  ;;  %v1722_v5 = vrot.slane %v1598_v59, 5  ;;  %v1900_v36 = vrot.slane %v1899_v61, 4 }
 0x15a   : > { %2123 = vmatmul.msk.bf16.gmra.mxu2 %vm1349_vm4, %v1406_v23  ;;  %v2987_v60 = vpack.c.b16 %v1532_v19, %v1531_v34  ;;  %v1801_v27 = vsel %vm2331_vm8, %v2145_v15, %v1800_v40 }
 0x15b   : > { %v1600_v55 = vor.u32 %v1598_v59, %v1597_v6  ;;  %v1804_v26 = vunpack.c.l.b16 %v1801_v27 }
 0x15d   : > { %2128 = vmatmul.msk.bf16.gmra.mxu3 %vm1349_vm4, %v2987_v60  ;;  %v1601_v20 = vsel %vm2331_vm8, %v2129_v44, %v1600_v55 }
 0x15e   : > { %v1604_v30 = vunpack.c.l.b16 %v1601_v20 }
 0x160   : > { %v1608_v49 = vpack.c.b16 %v1604_v30, %v1402_v4  ;;  %v1805_v11 = vpack.c.b16 %v1804_v26, %v1604_v30  ;;  %v1904_v4 = vrot.slane %v1902_v43, 5 }
 0x162   : > { %2134 = vmatmul.msk.bf16.gmra.mxu0 %vm1349_vm4, %v1608_v49  ;;  %v1905_v18 = vsel %vm2467_vm13, %v1900_v36, %v1904_v4 }
 0x163   : > { %2136 = vmatmul.msk.bf16.vlgmr.msrb.gmra.mxu1 %vm1349_vm4, %v1665_v28 }
 0x16a   : > { %2141 = vmatmul.msk.bf16.vlgmr.msra.gmra.mxu2 %vm1349_vm4, %v1733_v8 }
 0x16d   : > { %2147 = vmatmul.msk.bf16.vlgmr.msra.gmra.mxu3 %vm1349_vm4, %v2884_v63  ;;  %v1723_v63 = vor.u32 %v1722_v5, %v1721_v45 }
 0x172   : > { %2152 = vmatmul.msk.bf16.vlgmr.msra.gmra.mxu0 %vm1349_vm4, %v2854_v56  ;;  %v1735_v56 = vpack.c.b16 %v1531_v34, %v2950_v46  ;;  %v1668_v46 = vpack.c.b16 %v1664_v47, %v1344_v62  ;;  %v1853_v62 = vpack.c.b16 %v1852_v1, %v1664_v47 }
 0x173   : > { %2137 = vmatmul.msk.bf16.gmra.mxu1 %vm1349_vm4, %v1666_v54 }
 0x17a   : > { %2142 = vmatmul.msk.bf16.gmra.mxu2 %vm1349_vm4, %v1734_v12 }
 0x17d   : > { %2148 = vmatmul.msk.bf16.gmra.mxu3 %vm1349_vm4, %v2943_v9  ;;  %v1728_v9 = vrot.slane %v1726_v52, 5 }
 0x182   : > { %2153 = vmatmul.msk.bf16.gmra.mxu0 %vm1349_vm4, %v2925_v32  ;;  %v1724_v32 = vrot.slane %v1723_v63, 4 }
 0x183   : > { %2138 = vmatmul.msk.bf16.gmra.mxu1 %vm1349_vm4, %v1667_v3 }
 0x184   : > { %v1729_v41 = vsel %vm2467_vm13, %v1724_v32, %v1728_v9 }
 0x185   : > { %v1732_v25 = vunpack.c.l.b16 %v1729_v41 }
 0x187   : > { %v1736_v21 = vpack.c.b16 %v1732_v25, %v1532_v19 }
 0x18a   : > { %2143 = vmatmul.msk.bf16.gmra.mxu2 %vm1349_vm4, %v1735_v56 }
 0x18d   : > { %2149 = vmatmul.msk.bf16.gmra.mxu3 %vm1349_vm4, %v1406_v23  ;;  %v1908_v23 = vunpack.c.l.b16 %v1905_v18 }
 0x18f   : > { %v1909_v44 = vpack.c.b16 %v1908_v23, %v1732_v25 }
 0x192   : > { %2154 = vmatmul.msk.bf16.gmra.mxu0 %vm1349_vm4, %v2971_v16 }
 0x193   : > { %2139 = vmatmul.msk.bf16.gmra.mxu1 %vm1349_vm4, %v1668_v46 }
 0x19a   : > { %2144 = vmatmul.msk.bf16.gmra.mxu2 %vm1349_vm4, %v1736_v21 }
 0x19d   : > { %2150 = vmatmul.msk.bf16.gmra.mxu3 %vm1349_vm4, %v1805_v11 }
 0x1a0   : > { %v1375_v33 = vpop.f32.mrf.mxu1 }
 0x1a2   : > { %2155 = vmatmul.msk.bf16.gmra.mxu0 %vm1349_vm4, %v1853_v62 }
 0x1a3   : > { %2157 = vmatmul.msk.bf16.vlgmr.msra.gmra.mxu1 %vm1349_vm4, %v2900_v2 }
 0x1a8   : > { %v1377_v57 = vpop.f32.mrf.mxu1 }
 0x1ad   : > { %v1431_v53 = vpop.f32.mrf.mxu2 }
 0x1ae   : > { %v1432_v32 = vadd.f32 %v1431_v53, %v1375_v33 }
 0x1af   : > { %v1633_v48 = vpop.f32.mrf.mxu0 }
 0x1b0   : > { %v3039_v7 = vpop.f32.mrf.mxu1  ;;  %v1561_v13 = vpop.f32.mrf.mxu3 }
 0x1b1   : > { %v1581_v9 = vadd.f32 %v1561_v13, %v1432_v32 }
 0x1b3   : > { %2158 = vmatmul.msk.bf16.gmra.mxu1 %vm1349_vm4, %v2956_v50  ;;  %v1653_v46 = vadd.f32 %v1633_v48, %v1581_v9 }
 0x1b5   : > { %v1433_v29 = vpop.f32.mrf.mxu2 }
 0x1b6   : > { %v1434_v41 = vadd.f32 %v1433_v29, %v1377_v57  ;;  %v3096_v57 = vld [vmem:[%s3158_s4] ss:$0 sm:$0xff] }
 0x1b7   : > { %v1635_v42 = vpop.f32.mrf.mxu0 }
 0x1b8   : > { %v3043_v16 = vpop.f32.mrf.mxu1  ;;  %v1563_v2 = vpop.f32.mrf.mxu3 }
 0x1b9   : > { %v1582_v26 = vadd.f32 %v1563_v2, %v1434_v41 }
 0x1bb   : > { %v1654_v10 = vadd.f32 %v1635_v42, %v1582_v26 }
 0x1bd   : > { %v1436_v31 = vpop.f32.mrf.mxu2 }
 0x1be   : > { %v1437_v17 = vadd.f32 %v1436_v31, %v3039_v7 }
 0x1bf   : > { %v1638_v6 = vpop.f32.mrf.mxu0 }
 0x1c0   : > { %v3045_v0 = vpop.f32.mrf.mxu1  ;;  %v1566_v34 = vpop.f32.mrf.mxu3 }
 0x1c1   : > { %v1583_v13 = vadd.f32 %v1566_v34, %v1437_v17 }
 0x1c3   : > { %2159 = vmatmul.msk.bf16.gmra.mxu1 %vm1349_vm4, %v2987_v60  ;;  %v1655_v2 = vadd.f32 %v1638_v6, %v1583_v13 }
 0x1c5   : > { %v1438_v59 = vpop.f32.mrf.mxu2 }
 0x1c6   : > { %v1439_v36 = vadd.f32 %v1438_v59, %v3043_v16 }
 0x1c7   : > { %v3058_v20 = vpop.f32.mrf.mxu0 }
 0x1c8   : > { %v3049_v50 = vpop.f32.mrf.mxu1  ;;  %v1568_v60 = vpop.f32.mrf.mxu3 }
 0x1c9   : > { %v1584_v34 = vadd.f32 %v1568_v60, %v1439_v36 }
 0x1cd   : > { %v3060_v30 = vpop.f32.mrf.mxu2 }
 0x1cf   : > { %v3064_v24 = vpop.f32.mrf.mxu0 }
 0x1d0   : > { %v3053_v19 = vpop.f32.mrf.mxu1  ;;  %v3062_v28 = vpop.f32.mrf.mxu3 }
 0x1d3   : > { %2160 = vmatmul.msk.bf16.gmra.mxu1 %vm1349_vm4, %v1909_v44 }
 0x1d5   : > { %v3066_v8 = vpop.f32.mrf.mxu2 }
 0x1d7   : > { %v3070_v45 = vpop.f32.mrf.mxu0 }
 0x1d8   : > { %v3056_v55 = vpop.f32.mrf.mxu1  ;;  %v3068_v12 = vpop.f32.mrf.mxu3 }
 0x1dd   : > { %v3072_v5 = vpop.f32.mrf.mxu2 }
 0x1df   : > { %v3076_v56 = vpop.f32.mrf.mxu0 }
 0x1e0   : > { %v1693_v49 = vpop.f32.mrf.mxu1  ;;  %v3074_v58 = vpop.f32.mrf.mxu3 }
 0x1e1   : > { %v1713_v27 = vadd.f32 %v1693_v49, %v1653_v46 }
 0x1e5   : > { %v3078_v14 = vpop.f32.mrf.mxu2 }
 0x1e7   : > { %v3084_v51 = vpop.f32.mrf.mxu0 }
 0x1e8   : > { %v1695_v54 = vpop.f32.mrf.mxu1  ;;  %v3080_v63 = vpop.f32.mrf.mxu3 }
 0x1e9   : > { %v1714_v33 = vadd.f32 %v1695_v54, %v1654_v10 }
 0x1ed   : > { %v1761_v22 = vpop.f32.mrf.mxu2 }
 0x1ee   : > { %v1781_v21 = vadd.f32 %v1761_v22, %v1713_v27  ;;  %v1442_v22 = vadd.f32 %v3060_v30, %v3045_v0  ;;  %v1444_v30 = vadd.f32 %v3066_v8, %v3049_v50  ;;  %v1447_v8 = vadd.f32 %v3072_v5, %v3053_v19 }
 0x1ef   : > { %v1869_v37 = vpop.f32.mrf.mxu0  ;;  %v1449_v5 = vadd.f32 %v3078_v14, %v3056_v55 }
 0x1f0   : > { %v1698_v3 = vpop.f32.mrf.mxu1  ;;  %v1821_v47 = vpop.f32.mrf.mxu3  ;;  %v1585_v46 = vadd.f32 %v3062_v28, %v1442_v22  ;;  %v1586_v10 = vadd.f32 %v3068_v12, %v1444_v30 }
 0x1f1   : > { %v1841_v39 = vadd.f32 %v1821_v47, %v1781_v21  ;;  %v1715_v18 = vadd.f32 %v1698_v3, %v1655_v2  ;;  %v1656_v3 = vadd.f32 %v3058_v20, %v1584_v34  ;;  %v1587_v2 = vadd.f32 %v3074_v58, %v1447_v8 }
 0x1f2   : > { %v1657_v0 = vadd.f32 %v3064_v24, %v1585_v46  ;;  %v1658_v50 = vadd.f32 %v3070_v45, %v1586_v10 }
 0x1f3   : > { %v1889_v61 = vadd.f32 %v1869_v37, %v1841_v39  ;;  %v1659_v19 = vadd.f32 %v3076_v56, %v1587_v2 }
 0x1f5   : > { %v1763_v15 = vpop.f32.mrf.mxu2 }
 0x1f6   : > { %v1782_v43 = vadd.f32 %v1763_v15, %v1714_v33 }
 0x1f7   : > { %v1871_v1 = vpop.f32.mrf.mxu0 }
 0x1f8   : > { %v1700_v35 = vpop.f32.mrf.mxu1  ;;  %v1823_v25 = vpop.f32.mrf.mxu3 }
 0x1f9   : > { %v1842_v4 = vadd.f32 %v1823_v25, %v1782_v43  ;;  %v1716_v9 = vadd.f32 %v1700_v35, %v1656_v3 }
 0x1fb   : > { %v1890_v44 = vadd.f32 %v1871_v1, %v1842_v4 }
 0x1fd   : > { %v1766_v62 = vpop.f32.mrf.mxu2 }
 0x1fe   : > { %v1783_v49 = vadd.f32 %v1766_v62, %v1715_v18 }
 0x1ff   : > { %v1874_v42 = vpop.f32.mrf.mxu0 }
 0x200   : > { %v3082_v52 = vpop.f32.mrf.mxu1  ;;  %v1826_v53 = vpop.f32.mrf.mxu3 }
 0x201   : > { %v1843_v47 = vadd.f32 %v1826_v53, %v1783_v49  ;;  %v1717_v62 = vadd.f32 %v3082_v52, %v1657_v0  ;;  %v1588_v49 = vadd.f32 %v3080_v63, %v1449_v5 }
 0x203   : > { %v1891_v41 = vadd.f32 %v1874_v42, %v1843_v47  ;;  %v1660_v3 = vadd.f32 %v3084_v51, %v1588_v49 }
 0x205   : > { %v1768_v31 = vpop.f32.mrf.mxu2 }
 0x206   : > { %v1784_v25 = vadd.f32 %v1768_v31, %v1716_v9 }
 0x207   : > { %v1876_v37 = vpop.f32.mrf.mxu0 }
 0x208   : > { %v3086_v38 = vpop.f32.mrf.mxu1  ;;  %v1828_v54 = vpop.f32.mrf.mxu3 }
 0x209   : > { %v1844_v35 = vadd.f32 %v1828_v54, %v1784_v25  ;;  %v1718_v12 = vadd.f32 %v3086_v38, %v1658_v50 }
 0x20b   : > { %v1892_v17 = vadd.f32 %v1876_v37, %v1844_v35 }
 0x20d   : > { %v1771_v15 = vpop.f32.mrf.mxu2 }
 0x20e   : > { %v1785_v39 = vadd.f32 %v1771_v15, %v1717_v62 }
 0x20f   : > { %v1879_v33 = vpop.f32.mrf.mxu0 }
 0x210   : > { %v3088_v40 = vpop.f32.mrf.mxu1  ;;  %v1831_v21 = vpop.f32.mrf.mxu3 }
 0x211   : > { %v1845_v43 = vadd.f32 %v1831_v21, %v1785_v39  ;;  %v1719_v58 = vadd.f32 %v3088_v40, %v1659_v19 }
 0x213   : > { %v1893_v36 = vadd.f32 %v1879_v33, %v1845_v43 }
 0x215   : > { %v1773_v13 = vpop.f32.mrf.mxu2 }
 0x216   : > { %v1786_v4 = vadd.f32 %v1773_v13, %v1718_v12 }
 0x217   : > { %v1881_v31 = vpop.f32.mrf.mxu0 }
 0x218   : > { %v3090_v11 = vpop.f32.mrf.mxu1 }
 0x219   : > { %v1720_v40 = vadd.f32 %v3090_v11, %v1660_v3 }
 0x21d   : > { %v1776_v18 = vpop.f32.mrf.mxu2 }
 0x21e   : > { %v1787_v54 = vadd.f32 %v1776_v18, %v1719_v58 }
 0x21f   : > { %v1884_v22 = vpop.f32.mrf.mxu0 }
 0x220   : > { %v1925_v48 = vpop.f32.mrf.mxu1 }
 0x221   : > { %v1945_v29 = vadd.f32 %v1925_v48, %v1889_v61  ;;  %v1833_v48 = vpop.f32.mrf.mxu3 }
 0x223   : > { %v1957_v7 = vadd.f32 %v3096_v57, %v1945_v29 }
 0x225   : > { %v1965_v23 = vmax.f32 %v1957_v7, 0.0  ;;  %v1778_v47 = vpop.f32.mrf.mxu2 }
 0x226   : > { %v1788_v9 = vadd.f32 %v1778_v47, %v1720_v40 }
 0x227   : > { %v1973_v6 = vpack.c.bf16 %v1965_v23, %v1965_v23  ;;  %v1846_v23 = vadd.f32 %v1833_v48, %v1786_v4 }
 0x228   : > { %v1927_v16 = vpop.f32.mrf.mxu1 }
 0x229   : > { %1981 = vst.msk [vmem:[%s3105_s21] sm:$0xf] %vm300_vm15, %v1973_v6  ;;  %v1946_v59 = vadd.f32 %v1927_v16, %v1890_v44  ;;  %v1836_v44 = vpop.f32.mrf.mxu3  ;;  %v1894_v6 = vadd.f32 %v1881_v31, %v1846_v23 }
 0x22a   : > { %v1847_v55 = vadd.f32 %v1836_v44, %v1787_v54 }
 0x22b   : > { %v1958_v32 = vadd.f32 %v3096_v57, %v1946_v59 }
 0x22c   : > { %v1895_v63 = vadd.f32 %v1884_v22, %v1847_v55 }
 0x22d   : > { %v1966_v60 = vmax.f32 %v1958_v32, 0.0 }
 0x22f   : > { %v1974_v27 = vpack.c.bf16 %v1966_v60, %v1966_v60 }
 0x230   : > { %v1930_v26 = vpop.f32.mrf.mxu1 }
 0x231   : > { %1982 = vst.msk [vmem:[%s3105_s21 + $0x4] sm:$0xf] %vm300_vm15, %v1974_v27  ;;  %v1947_v20 = vadd.f32 %v1930_v26, %v1891_v41  ;;  %v1838_v60 = vpop.f32.mrf.mxu3  ;;  %v1886_v27 = vpop.f32.mrf.mxu0 }
 0x232   : > { %v1848_v41 = vadd.f32 %v1838_v60, %v1788_v9 }
 0x233   : > { %v1959_v1 = vadd.f32 %v3096_v57, %v1947_v20 }
 0x234   : > { %v1896_v26 = vadd.f32 %v1886_v27, %v1848_v41 }
 0x235   : > { %v1967_v28 = vmax.f32 %v1959_v1, 0.0 }
 0x237   : > { %v1975_v53 = vpack.c.bf16 %v1967_v28, %v1967_v28 }
 0x238   : > { %v1932_v61 = vpop.f32.mrf.mxu1 }
 0x239   : > { %1983 = vst.msk [vmem:[%s3105_s21 + $0x8] sm:$0xf] %vm300_vm15, %v1975_v53  ;;  %v1948_v24 = vadd.f32 %v1932_v61, %v1892_v17 }
 0x23b   : > { %v1960_v52 = vadd.f32 %v3096_v57, %v1948_v24 }
 0x23d   : > { %v1968_v29 = vmax.f32 %v1960_v52, 0.0 }
 0x23f   : > { %v1976_v42 = vpack.c.bf16 %v1968_v29, %v1968_v29 }
 0x240   : > { %v1935_v7 = vpop.f32.mrf.mxu1 }
 0x241   : > { %1984 = vst.msk [vmem:[%s3105_s21 + $0xc] sm:$0xf] %vm300_vm15, %v1976_v42  ;;  %v1949_v45 = vadd.f32 %v1935_v7, %v1893_v36 }
 0x243   : > { %v1961_v38 = vadd.f32 %v3096_v57, %v1949_v45 }
 0x245   : > { %v1969_v34 = vmax.f32 %v1961_v38, 0.0 }
 0x247   : > { %v1977_v16 = vpack.c.bf16 %v1969_v34, %v1969_v34 }
 0x248   : > { %v1937_v59 = vpop.f32.mrf.mxu1 }
 0x249   : > { %1985 = vst.msk [vmem:[%s3105_s21 + $0x10] sm:$0xf] %vm300_vm15, %v1977_v16  ;;  %v1950_v56 = vadd.f32 %v1937_v59, %v1894_v6 }
 0x24b   : > { %v1962_v14 = vadd.f32 %v3096_v57, %v1950_v56 }
 0x24d   : > { %v1970_v32 = vmax.f32 %v1962_v14, 0.0 }
 0x24f   : > { %v1978_v37 = vpack.c.bf16 %v1970_v32, %v1970_v32 }
 0x250   : > { %v1940_v15 = vpop.f32.mrf.mxu1 }
 0x251   : > { %1986 = vst.msk [vmem:[%s3105_s21 + $0x14] sm:$0xf] %vm300_vm15, %v1978_v37  ;;  %v1951_v46 = vadd.f32 %v1940_v15, %v1895_v63 }
 0x253   : > { %v1963_v51 = vadd.f32 %v3096_v57, %v1951_v46 }
 0x255   : > { %v1971_v25 = vmax.f32 %v1963_v51, 0.0 }
 0x257   : > { %v1979_v20 = vpack.c.bf16 %v1971_v25, %v1971_v25 }
 0x258   : > { %v1942_v21 = vpop.f32.mrf.mxu1 }
 0x259   : > { %1987 = vst.msk [vmem:[%s3105_s21 + $0x18] sm:$0xf] %vm300_vm15, %v1979_v20  ;;  %v1952_v11 = vadd.f32 %v1942_v21, %v1896_v26 }
 0x25b   : > { %v1964_v0 = vadd.f32 %v3096_v57, %v1952_v11 }
 0x25d   : > { %v1972_v30 = vmax.f32 %v1964_v0, 0.0 }
 0x25f   : > { %v1980_v35 = vpack.c.bf16 %v1972_v30, %v1972_v30 }
 0x261   : > { %1988 = vst.msk [vmem:[%s3105_s21 + $0x1c] sm:$0xf] %vm300_vm15, %v1980_v35 }
 0x262 PF: > { %s15_s18 = sadd.s32 1, %s2184_s18  }
 0x263   : > { %p12_p4 = scmp.ge.s32.totalorder %s15_s18, 4  }
 0x265   :  { %14 = sbr.rel (!%p12_p4) target bundleno = 1 (0x1), region = 90 }

</bundles_post_ra>
